<compile_context>
chip_gen: v5e
topology: v5e:2x2
jax: 0.10.0
libtpu: 0.0.40
codegen_flags: <defaults>
</compile_context>

<pallas_src>
import functools

import jax
import jax.numpy as jnp
from jax.experimental import pallas as pl
from jax.experimental.pallas import tpu as pltpu

D_IN, D_H1, D_H2, D_OUT = 784, 512, 256, 10
D_OUT_PAD = 128   # lane-dense logits width (padded cols masked via bias)


def _round_up(n, m):
    return ((n + m - 1) // m) * m


def _mlp_kernel(x_ref, w1_ref, b1_ref, w2_ref, b2_ref, w3_ref, b3_ref, o_ref):
    # Downcast only at the MXU dots; accumulate + elementwise in f32.
    x = x_ref[...].astype(jnp.bfloat16)

    # fc1 + relu
    h1 = jnp.dot(x, w1_ref[...], preferred_element_type=jnp.float32)
    h1 = jnp.maximum(h1 + b1_ref[...], 0.0)

    # fc2 + relu
    h2 = jnp.dot(h1.astype(jnp.bfloat16), w2_ref[...],
                 preferred_element_type=jnp.float32)
    h2 = jnp.maximum(h2 + b2_ref[...], 0.0)

    # fc3: padded w3 columns are zero, and b3 carries -1e30 on the pad columns,
    # so the padded logits are already "masked" for log_softmax.
    logits = jnp.dot(h2.astype(jnp.bfloat16), w3_ref[...],
                     preferred_element_type=jnp.float32)
    logits = logits + b3_ref[...]

    # numerically stable log_softmax over last dim
    m = jnp.max(logits, axis=-1, keepdims=True)
    z = logits - m
    lse = jnp.log(jnp.sum(jnp.exp(z), axis=-1, keepdims=True))
    o_ref[...] = (z - lse).astype(o_ref.dtype)


@functools.partial(jax.jit, static_argnames=("tb",))
def xavier_mlp_forward(x, w1, b1, w2, b2, w3, b3, *, tb=512):
    """x: [..., 784] (anything reshapeable to [-1, 784]). Returns [B, 10]."""
    x2d = x.reshape(-1, D_IN).astype(jnp.float32)
    batch = x2d.shape[0]

    # bf16 weights for the MXU; biases normalized to f32.
    w1b = w1.astype(jnp.bfloat16)
    w2b = w2.astype(jnp.bfloat16)
    w3b = jnp.pad(w3.astype(jnp.bfloat16), ((0, 0), (0, D_OUT_PAD - D_OUT)))
    b1f = b1.reshape(1, D_H1).astype(jnp.float32)
    b2f = b2.reshape(1, D_H2).astype(jnp.float32)
    # Bake the padded-logit mask into the bias (padded logits == bias exactly).
    b3f = jnp.full((1, D_OUT_PAD), -1e30, dtype=jnp.float32)
    b3f = b3f.at[:, :D_OUT].set(b3.reshape(1, D_OUT).astype(jnp.float32))

    # Batch tile: multiple of 8 sublanes, collapses for small batches; for
    # batch > 256 force >= 2 grid steps so the parallel axis feeds both v7x TCs.
    tile_b = min(tb, _round_up(batch, 8))
    if batch > 256 and pl.cdiv(batch, tile_b) < 2:
        tile_b = _round_up(pl.cdiv(batch, 2), 8)
    grid = (pl.cdiv(batch, tile_b),)   # partial last block handled by Pallas

    # x / out tiles advance with the grid; weights & biases use a constant
    # index_map so they stay VMEM-resident across the whole batch.
    const = lambda shape: pl.BlockSpec(shape, lambda i: tuple(0 for _ in shape))

    weight_bytes = 2 * (D_IN * D_H1 + D_H1 * D_H2 + D_H2 * D_OUT_PAD) \
        + 4 * (D_H1 + D_H2 + D_OUT_PAD)
    cost = pl.CostEstimate(
        flops=2 * batch * (D_IN * D_H1 + D_H1 * D_H2 + D_H2 * D_OUT_PAD),
        transcendentals=batch * (D_OUT_PAD + 1),
        bytes_accessed=batch * D_IN * 4 + batch * D_OUT_PAD * 4 + weight_bytes,
    )

    out = pl.pallas_call(
        _mlp_kernel,
        out_shape=jax.ShapeDtypeStruct((batch, D_OUT_PAD), jnp.float32),
        grid=grid,
        in_specs=[
            pl.BlockSpec((tile_b, D_IN), lambda i: (i, 0)),
            const((D_IN, D_H1)),
            const((1, D_H1)),
            const((D_H1, D_H2)),
            const((1, D_H2)),
            const((D_H2, D_OUT_PAD)),
            const((1, D_OUT_PAD)),
        ],
        out_specs=pl.BlockSpec((tile_b, D_OUT_PAD), lambda i: (i, 0)),
        compiler_params=pltpu.CompilerParams(
            dimension_semantics=("parallel",)),
        cost_estimate=cost,
    )(x2d, w1b, b1f, w2b, b2f, w3b, b3f)

    # Drop the padded logit columns (batch dim is exact, no slice needed there).
    return out[:, :D_OUT]


def init_params(key):
    """Xavier-normal weights (gain=1), biases filled with 0.01 (as in torch)."""
    k1, k2, k3 = jax.random.split(key, 3)

    def xavier_normal(k, fan_in, fan_out):
        std = (2.0 / (fan_in + fan_out)) ** 0.5
        # stored as [in, out] (transpose of torch's [out, in]) for x @ W
        return std * jax.random.normal(k, (fan_in, fan_out), dtype=jnp.float32)

    w1 = xavier_normal(k1, D_IN, D_H1)
    w2 = xavier_normal(k2, D_H1, D_H2)
    w3 = xavier_normal(k3, D_H2, D_OUT)
    b1 = jnp.full((1, D_H1), 0.01, dtype=jnp.float32)
    b2 = jnp.full((1, D_H2), 0.01, dtype=jnp.float32)
    b3 = jnp.full((1, D_OUT), 0.01, dtype=jnp.float32)
    return w1, b1, w2, b2, w3, b3


def _reference(x, w1, b1, w2, b2, w3, b3):
    x = x.reshape(-1, D_IN).astype(jnp.float32)
    h1 = jnp.maximum(x @ w1 + b1, 0.0)
    h2 = jnp.maximum(h1 @ w2 + b2, 0.0)
    logits = h2 @ w3 + b3
    return jax.nn.log_softmax(logits, axis=1)


if __name__ == "__main__":
    key = jax.random.PRNGKey(0)
    k_params, k_x, k_x2 = jax.random.split(key, 3)

    params = init_params(k_params)

    # MNIST-like input: batch=8, 1x28x28 images (flattened to 784 in forward)
    x = jax.random.normal(k_x, (8, 1, 28, 28), dtype=jnp.float32)
    out = jax.block_until_ready(xavier_mlp_forward(x, *params))
    ref = _reference(x, *params)
    assert out.shape == (8, D_OUT)
    # bf16 MXU operands with f32 accumulation: relaxed tolerance vs f32 reference
    assert jnp.allclose(out, ref, atol=5e-2, rtol=5e-2), float(
        jnp.max(jnp.abs(out - ref)))

    # Larger, non-tile-multiple batch: exercises the multi-step grid and the
    # partial last block (no wrapper-side batch padding).
    x_big = jax.random.normal(k_x2, (300, 1, 28, 28), dtype=jnp.float32)
    out_big = jax.block_until_ready(xavier_mlp_forward(x_big, *params))
    ref_big = _reference(x_big, *params)
    assert out_big.shape == (300, D_OUT)
    assert jnp.allclose(out_big, ref_big, atol=5e-2, rtol=5e-2), float(
        jnp.max(jnp.abs(out_big - ref_big)))

    print("KERNEL_OK")
</pallas_src>

<mosaic_0001>
module attributes {stable_mosaic.version = 11 : i64} {
  func.func @_mlp_kernel(%arg0: i32, %arg1: memref<8x784xf32, #tpu.memory_space<vmem>>, %arg2: memref<784x512xbf16, #tpu.memory_space<vmem>>, %arg3: memref<1x512xf32, #tpu.memory_space<vmem>>, %arg4: memref<512x256xbf16, #tpu.memory_space<vmem>>, %arg5: memref<1x256xf32, #tpu.memory_space<vmem>>, %arg6: memref<256x128xbf16, #tpu.memory_space<vmem>>, %arg7: memref<1x128xf32, #tpu.memory_space<vmem>>, %arg8: memref<8x128xf32, #tpu.memory_space<vmem>>) attributes {dimension_semantics = [#tpu.dimension_semantics<parallel>], iteration_bounds = array<i64: 1>, scalar_prefetch = 0 : i64, scratch_operands = 0 : i64, tpu.core_type = #tpu.core_type<tc>, window_params = [{transform_indices = @transform_0, window_bounds = array<i64: 8, 784>}, {pipeline_mode = #tpu.pipeline_mode<synchronous>, transform_indices = @transform_1, window_bounds = array<i64: 784, 512>}, {pipeline_mode = #tpu.pipeline_mode<synchronous>, transform_indices = @transform_2, window_bounds = array<i64: 1, 512>}, {pipeline_mode = #tpu.pipeline_mode<synchronous>, transform_indices = @transform_3, window_bounds = array<i64: 512, 256>}, {pipeline_mode = #tpu.pipeline_mode<synchronous>, transform_indices = @transform_4, window_bounds = array<i64: 1, 256>}, {pipeline_mode = #tpu.pipeline_mode<synchronous>, transform_indices = @transform_5, window_bounds = array<i64: 256, 128>}, {pipeline_mode = #tpu.pipeline_mode<synchronous>, transform_indices = @transform_6, window_bounds = array<i64: 1, 128>}, {transform_indices = @transform_7, window_bounds = array<i64: 8, 128>}]} {
    %c0 = arith.constant 0 : index
    %c0_0 = arith.constant 0 : index
    %0 = vector.load %arg1[%c0, %c0_0] : memref<8x784xf32, #tpu.memory_space<vmem>>, vector<8x784xf32>
    %1 = arith.truncf %0 : vector<8x784xf32> to vector<8x784xbf16>
    %c0_1 = arith.constant 0 : index
    %c0_2 = arith.constant 0 : index
    %2 = vector.load %arg2[%c0_1, %c0_2] : memref<784x512xbf16, #tpu.memory_space<vmem>>, vector<784x512xbf16>
    %cst = arith.constant dense<0.000000e+00> : vector<8x512xf32>
    %3 = tpu.matmul %1, %2, %cst {dimension_numbers = #tpu.dot_dimension_numbers<[1], [0], [0], [1], [0, 0, 1, 1], [], []>} : vector<8x784xbf16>, vector<784x512xbf16>, vector<8x512xf32> -> vector<8x512xf32>
    %c0_3 = arith.constant 0 : index
    %c0_4 = arith.constant 0 : index
    %4 = vector.load %arg3[%c0_3, %c0_4] : memref<1x512xf32, #tpu.memory_space<vmem>>, vector<1x512xf32>
    %5 = vector.broadcast %4 : vector<1x512xf32> to vector<8x512xf32>
    %6 = arith.addf %3, %5 : vector<8x512xf32>
    %cst_5 = arith.constant 0.000000e+00 : f32
    %7 = vector.broadcast %cst_5 : f32 to vector<8x512xf32>
    %8 = arith.maximumf %6, %7 : vector<8x512xf32>
    %9 = arith.truncf %8 : vector<8x512xf32> to vector<8x512xbf16>
    %c0_6 = arith.constant 0 : index
    %c0_7 = arith.constant 0 : index
    %10 = vector.load %arg4[%c0_6, %c0_7] : memref<512x256xbf16, #tpu.memory_space<vmem>>, vector<512x256xbf16>
    %cst_8 = arith.constant dense<0.000000e+00> : vector<8x256xf32>
    %11 = tpu.matmul %9, %10, %cst_8 {dimension_numbers = #tpu.dot_dimension_numbers<[1], [0], [0], [1], [0, 0, 1, 1], [], []>} : vector<8x512xbf16>, vector<512x256xbf16>, vector<8x256xf32> -> vector<8x256xf32>
    %c0_9 = arith.constant 0 : index
    %c0_10 = arith.constant 0 : index
    %12 = vector.load %arg5[%c0_9, %c0_10] : memref<1x256xf32, #tpu.memory_space<vmem>>, vector<1x256xf32>
    %13 = vector.broadcast %12 : vector<1x256xf32> to vector<8x256xf32>
    %14 = arith.addf %11, %13 : vector<8x256xf32>
    %cst_11 = arith.constant 0.000000e+00 : f32
    %15 = vector.broadcast %cst_11 : f32 to vector<8x256xf32>
    %16 = arith.maximumf %14, %15 : vector<8x256xf32>
    %17 = arith.truncf %16 : vector<8x256xf32> to vector<8x256xbf16>
    %c0_12 = arith.constant 0 : index
    %c0_13 = arith.constant 0 : index
    %18 = vector.load %arg6[%c0_12, %c0_13] : memref<256x128xbf16, #tpu.memory_space<vmem>>, vector<256x128xbf16>
    %cst_14 = arith.constant dense<0.000000e+00> : vector<8x128xf32>
    %19 = tpu.matmul %17, %18, %cst_14 {dimension_numbers = #tpu.dot_dimension_numbers<[1], [0], [0], [1], [0, 0, 1, 1], [], []>} : vector<8x256xbf16>, vector<256x128xbf16>, vector<8x128xf32> -> vector<8x128xf32>
    %c0_15 = arith.constant 0 : index
    %c0_16 = arith.constant 0 : index
    %20 = vector.load %arg7[%c0_15, %c0_16] : memref<1x128xf32, #tpu.memory_space<vmem>>, vector<1x128xf32>
    %21 = vector.broadcast %20 : vector<1x128xf32> to vector<8x128xf32>
    %22 = arith.addf %19, %21 : vector<8x128xf32>
    %cst_17 = arith.constant dense<0xFF800000> : vector<8xf32>
    %23 = vector.multi_reduction <maximumf>, %22, %cst_17 [1] : vector<8x128xf32> to vector<8xf32>
    %24 = vector.shape_cast %23 : vector<8xf32> to vector<8x1xf32>
    %25 = vector.broadcast %24 : vector<8x1xf32> to vector<8x128xf32>
    %26 = arith.subf %22, %25 : vector<8x128xf32>
    %27 = math.exp %26 : vector<8x128xf32>
    %cst_18 = arith.constant dense<0.000000e+00> : vector<8xf32>
    %28 = vector.multi_reduction <add>, %27, %cst_18 [1] : vector<8x128xf32> to vector<8xf32>
    %29 = vector.shape_cast %28 : vector<8xf32> to vector<8x1xf32>
    %30 = math.log %29 : vector<8x1xf32>
    %31 = vector.broadcast %30 : vector<8x1xf32> to vector<8x128xf32>
    %32 = arith.subf %26, %31 : vector<8x128xf32>
    %c0_19 = arith.constant 0 : index
    %c0_20 = arith.constant 0 : index
    %33 = vector.load %arg8[%c0_19, %c0_20] : memref<8x128xf32, #tpu.memory_space<vmem>>, vector<8x128xf32>
    tpu.vector_store %arg8[%c0_19, %c0_20], %32 {strides = array<i32>} : memref<8x128xf32, #tpu.memory_space<vmem>>, vector<8x128xf32>,
    return
  }
  func.func @transform_0(%arg0: i32) -> (i32, i32) {
    %c0_i32 = arith.constant 0 : i32
    %c0_i32_0 = arith.constant 0 : i32
    return %arg0, %c0_i32 : i32, i32
  }
  func.func @transform_1(%arg0: i32) -> (i32, i32) {
    %c0_i32 = arith.constant 0 : i32
    %c0_i32_0 = arith.constant 0 : i32
    %c0_i32_1 = arith.constant 0 : i32
    return %c0_i32, %c0_i32_0 : i32, i32
  }
  func.func @transform_2(%arg0: i32) -> (i32, i32) {
    %c0_i32 = arith.constant 0 : i32
    %c0_i32_0 = arith.constant 0 : i32
    %c0_i32_1 = arith.constant 0 : i32
    return %c0_i32, %c0_i32_0 : i32, i32
  }
  func.func @transform_3(%arg0: i32) -> (i32, i32) {
    %c0_i32 = arith.constant 0 : i32
    %c0_i32_0 = arith.constant 0 : i32
    %c0_i32_1 = arith.constant 0 : i32
    return %c0_i32, %c0_i32_0 : i32, i32
  }
  func.func @transform_4(%arg0: i32) -> (i32, i32) {
    %c0_i32 = arith.constant 0 : i32
    %c0_i32_0 = arith.constant 0 : i32
    %c0_i32_1 = arith.constant 0 : i32
    return %c0_i32, %c0_i32_0 : i32, i32
  }
  func.func @transform_5(%arg0: i32) -> (i32, i32) {
    %c0_i32 = arith.constant 0 : i32
    %c0_i32_0 = arith.constant 0 : i32
    %c0_i32_1 = arith.constant 0 : i32
    return %c0_i32, %c0_i32_0 : i32, i32
  }
  func.func @transform_6(%arg0: i32) -> (i32, i32) {
    %c0_i32 = arith.constant 0 : i32
    %c0_i32_0 = arith.constant 0 : i32
    %c0_i32_1 = arith.constant 0 : i32
    return %c0_i32, %c0_i32_0 : i32, i32
  }
  func.func @transform_7(%arg0: i32) -> (i32, i32) {
    %c0_i32 = arith.constant 0 : i32
    %c0_i32_0 = arith.constant 0 : i32
    return %arg0, %c0_i32 : i32, i32
  }
}

</mosaic_0001>

<bundles_post_ra>
// kernel: xavier_mlp_forward.1
= control target key start
LH: loop header
LB: loop body
LE: loop exit
PB: predicated region body
PF: predicated region fallthrough
CT: control target
= control target key end

     0   :  { %vm1228_vm0 = vcmask 130048   ;;  %s5453_s0 = inlined_call_operand.vmem [shape: f32[8,784], index: 0, kind: input, shape index: {}]   ;;  %s5454_s1 = inlined_call_operand.vmem [shape: bf16[784,512], index: 1, kind: input, shape index: {}]   ;;  %s5455_s2 = inlined_call_operand.vmem [shape: f32[1,512], index: 2, kind: input, shape index: {}]   ;;  %s5456_s3 = inlined_call_operand.vmem [shape: bf16[512,256], index: 3, kind: input, shape index: {}]   ;;  %s5457_s4 = inlined_call_operand.vmem [shape: f32[1,256], index: 4, kind: input, shape index: {}]   ;;  %s5458_s5 = inlined_call_operand.vmem [shape: bf16[256,128], index: 5, kind: input, shape index: {}]   ;;  %s5459_s6 = inlined_call_operand.vmem [shape: f32[1,128], index: 6, kind: input, shape index: {}]   ;;  %s5460_s7 = inlined_call_operand.hbm [shape: f32[8,128], index: 7, kind: output, shape index: {}]  }
   0x1   :  { %v2401_v0 = vld [vmem:[%s5454_s1 + $0xe0] sm:$0xf]  ;;  %v3425_v1 = vld [vmem:[%s5454_s1 + $0xec] sm:$0xf0] }
   0x2   :  { %v2529_v2 = vld [vmem:[%s5454_s1 + $0x1e0] sm:$0xf]  ;;  %v2402_v3 = vor.u32 %v3425_v1, %v2401_v0  ;;  %v3457_v4 = vld [vmem:[%s5454_s1 + $0x1ec] sm:$0xf0] }
   0x3   :  { %v2657_v5 = vld [vmem:[%s5454_s1 + $0x2e0] sm:$0xf]  ;;  %v3489_v6 = vld [vmem:[%s5454_s1 + $0x2ec] sm:$0xf0]  ;;  %v2530_v7 = vor.u32 %v3457_v4, %v2529_v2 }
   0x4   :  { %v2658_v8 = vor.u32 %v3489_v6, %v2657_v5  ;;  %v2785_v9 = vld [vmem:[%s5454_s1 + $0x3e0] sm:$0xf]  ;;  %v3521_v10 = vld [vmem:[%s5454_s1 + $0x3ec] sm:$0xf0]  ;;  %1232 = vmatpush.bf16.msra.mxu0 %v2402_v3 }
   0x5   :  { %v2385_v11 = vld [vmem:[%s5454_s1 + $0xc0] sm:$0xf]  ;;  %v2786_v12 = vor.u32 %v3521_v10, %v2785_v9  ;;  %v3421_v13 = vld [vmem:[%s5454_s1 + $0xcc] sm:$0xf0]  ;;  %1245 = vmatpush.bf16.msra.mxu1 %v2530_v7 }
   0x6   :  { %v2513_v14 = vld [vmem:[%s5454_s1 + $0x1c0] sm:$0xf]  ;;  %v3453_v15 = vld [vmem:[%s5454_s1 + $0x1cc] sm:$0xf0]  ;;  %1258 = vmatpush.bf16.msra.mxu2 %v2658_v8  ;;  %v2386_v16 = vor.u32 %v3421_v13, %v2385_v11 }
   0x7   :  { %v2514_v17 = vor.u32 %v3453_v15, %v2513_v14  ;;  %v2641_v18 = vld [vmem:[%s5454_s1 + $0x2c0] sm:$0xf]  ;;  %v3485_v19 = vld [vmem:[%s5454_s1 + $0x2cc] sm:$0xf0]  ;;  %1271 = vmatpush.bf16.msra.mxu3 %v2786_v12 }
   0x8   :  { %v2769_v20 = vld [vmem:[%s5454_s1 + $0x3c0] sm:$0xf]  ;;  %v2642_v21 = vor.u32 %v3485_v19, %v2641_v18  ;;  %v3517_v22 = vld [vmem:[%s5454_s1 + $0x3cc] sm:$0xf0]  ;;  %1233 = vmatpush.bf16.msra.mxu0 %v2386_v16 }
   0x9   :  { %v2369_v23 = vld [vmem:[%s5454_s1 + $0xa0] sm:$0xf]  ;;  %v3417_v24 = vld [vmem:[%s5454_s1 + $0xac] sm:$0xf0]  ;;  %v2770_v25 = vor.u32 %v3517_v22, %v2769_v20  ;;  %1246 = vmatpush.bf16.msra.mxu1 %v2514_v17 }
   0xa   :  { %v2497_v26 = vld [vmem:[%s5454_s1 + $0x1a0] sm:$0xf]  ;;  %v3449_v27 = vld [vmem:[%s5454_s1 + $0x1ac] sm:$0xf0]  ;;  %v2370_v29 = vor.u32 %v3417_v24, %v2369_v23  ;;  %1259 = vmatpush.bf16.msra.mxu2 %v2642_v21 }
   0xb   :  { %v2625_v28 = vld [vmem:[%s5454_s1 + $0x2a0] sm:$0xf]  ;;  %v3481_v30 = vld [vmem:[%s5454_s1 + $0x2ac] sm:$0xf0]  ;;  %v2498_v33 = vor.u32 %v3449_v27, %v2497_v26  ;;  %1272 = vmatpush.bf16.msra.mxu3 %v2770_v25 }
   0xc   :  { %v2753_v31 = vld [vmem:[%s5454_s1 + $0x3a0] sm:$0xf]  ;;  %v3513_v32 = vld [vmem:[%s5454_s1 + $0x3ac] sm:$0xf0]  ;;  %v2626_v34 = vor.u32 %v3481_v30, %v2625_v28  ;;  %1234 = vmatpush.bf16.msra.mxu0 %v2370_v29 }
   0xd   :  { %v2353_v35 = vld [vmem:[%s5454_s1 + $0x80] sm:$0xf]  ;;  %v3413_v36 = vld [vmem:[%s5454_s1 + $0x8c] sm:$0xf0]  ;;  %v2754_v38 = vor.u32 %v3513_v32, %v2753_v31  ;;  %1247 = vmatpush.bf16.msra.mxu1 %v2498_v33  ;;  %v3423_v33 = vld [vmem:[%s5454_s1 + $0xe4] sm:$0xf] }
   0xe   :  { %v2481_v37 = vld [vmem:[%s5454_s1 + $0x180] sm:$0xf]  ;;  %v3445_v39 = vld [vmem:[%s5454_s1 + $0x18c] sm:$0xf0]  ;;  %v2354_v44 = vor.u32 %v3413_v36, %v2353_v35  ;;  %1260 = vmatpush.bf16.msra.mxu2 %v2626_v34  ;;  %v2403_v34 = vld [vmem:[%s5454_s1 + $0xf0] sm:$0xf0] }
   0xf   :  { %v2609_v40 = vld [vmem:[%s5454_s1 + $0x280] sm:$0xf]  ;;  %v3477_v41 = vld [vmem:[%s5454_s1 + $0x28c] sm:$0xf0]  ;;  %v2482_v45 = vor.u32 %v3445_v39, %v2481_v37  ;;  %1273 = vmatpush.bf16.msra.mxu3 %v2754_v38 }
  0x10   :  { %v2737_v42 = vld [vmem:[%s5454_s1 + $0x380] sm:$0xf]  ;;  %v3509_v43 = vld [vmem:[%s5454_s1 + $0x38c] sm:$0xf0]  ;;  %v2610_v46 = vor.u32 %v3477_v41, %v2609_v40  ;;  %1235 = vmatpush.bf16.msra.mxu0 %v2354_v44  ;;  %v2531_v44 = vld [vmem:[%s5454_s1 + $0x1f0] sm:$0xf0] }
  0x11   :  { %v2337_v47 = vld [vmem:[%s5454_s1 + $0x60] sm:$0xf]  ;;  %v3409_v48 = vld [vmem:[%s5454_s1 + $0x6c] sm:$0xf0]  ;;  %v2738_v50 = vor.u32 %v3509_v43, %v2737_v42  ;;  %1248 = vmatpush.bf16.msra.mxu1 %v2482_v45  ;;  %v3455_v43 = vld [vmem:[%s5454_s1 + $0x1e4] sm:$0xf] }
  0x12   :  { %v2465_v49 = vld [vmem:[%s5454_s1 + $0x160] sm:$0xf]  ;;  %v3441_v51 = vld [vmem:[%s5454_s1 + $0x16c] sm:$0xf0]  ;;  %v2338_v56 = vor.u32 %v3409_v48, %v2337_v47  ;;  %1261 = vmatpush.bf16.msra.mxu2 %v2610_v46  ;;  %v31_v45 = vld [vmem:[%s5453_s0 + $0x18] sm:$0xff]  ;;  %v2406_v47 = vor.u32 %v3423_v33, %v2403_v34 }
  0x13   :  { %v2593_v52 = vld [vmem:[%s5454_s1 + $0x260] sm:$0xf]  ;;  %v3473_v53 = vld [vmem:[%s5454_s1 + $0x26c] sm:$0xf0]  ;;  %v2466_v57 = vor.u32 %v3441_v51, %v2465_v49  ;;  %1274 = vmatpush.bf16.msra.mxu3 %v2738_v50 }
  0x14   :  { %v2721_v54 = vld [vmem:[%s5454_s1 + $0x360] sm:$0xf]  ;;  %v3505_v55 = vld [vmem:[%s5454_s1 + $0x36c] sm:$0xf0]  ;;  %v2594_v58 = vor.u32 %v3473_v53, %v2593_v52  ;;  %1236 = vmatpush.bf16.msra.mxu0 %v2338_v56  ;;  %v3419_v53 = vld [vmem:[%s5454_s1 + $0xc4] sm:$0xf] }
  0x15   :  { %v2321_v59 = vld [vmem:[%s5454_s1 + $0x40] sm:$0xf]  ;;  %v3405_v60 = vld [vmem:[%s5454_s1 + $0x4c] sm:$0xf0]  ;;  %v2722_v62 = vor.u32 %v3505_v55, %v2721_v54  ;;  %1249 = vmatpush.bf16.msra.mxu1 %v2466_v57  ;;  %v2387_v54 = vld [vmem:[%s5454_s1 + $0xd0] sm:$0xf0]  ;;  %v3997_v57 = vpack.c.bf16 %v31_v45, %v31_v45 }
  0x16   :  { %v2449_v61 = vld [vmem:[%s5454_s1 + $0x140] sm:$0xf]  ;;  %v3437_v63 = vld [vmem:[%s5454_s1 + $0x14c] sm:$0xf0]  ;;  %v2322_v4 = vor.u32 %v3405_v60, %v2321_v59  ;;  %1262 = vmatpush.bf16.msra.mxu2 %v2594_v58  ;;  %v29_v58 = vld [vmem:[%s5453_s0 + $0x8] sm:$0xff]  ;;  %v2534_v59 = vor.u32 %v3455_v43, %v2531_v44 }
  0x17   :  { %v2577_v0 = vld [vmem:[%s5454_s1 + $0x240] sm:$0xf]  ;;  %v3469_v1 = vld [vmem:[%s5454_s1 + $0x24c] sm:$0xf0]  ;;  %v2450_v5 = vor.u32 %v3437_v63, %v2449_v61  ;;  %1275 = vmatpush.bf16.msra.mxu3 %v2722_v62  ;;  %v3451_v61 = vld [vmem:[%s5454_s1 + $0x1c4] sm:$0xf] }
  0x18   :  { %v2705_v2 = vld [vmem:[%s5454_s1 + $0x340] sm:$0xf]  ;;  %v3501_v3 = vld [vmem:[%s5454_s1 + $0x34c] sm:$0xf0]  ;;  %v2578_v6 = vor.u32 %v3469_v1, %v2577_v0  ;;  %1237 = vmatpush.bf16.msra.mxu0 %v2322_v4  ;;  %v2515_v62 = vld [vmem:[%s5454_s1 + $0x1d0] sm:$0xf0]  ;;  %v2390_v0 = vor.u32 %v3419_v53, %v2387_v54  ;;  %v4019_v4 = vpack.c.bf16 %v29_v58, %v29_v58 }
  0x19   :  { %v2305_v7 = vld [vmem:[%s5454_s1 + $0x20] sm:$0xf]  ;;  %v3401_v8 = vld [vmem:[%s5454_s1 + $0x2c] sm:$0xf0]  ;;  %v2706_v10 = vor.u32 %v3501_v3, %v2705_v2  ;;  %1250 = vmatpush.bf16.msra.mxu1 %v2450_v5  ;;  %v3403_v43 = vld [vmem:[%s5454_s1 + $0x44] sm:$0xf] }
  0x1a   :  { %v2433_v9 = vld [vmem:[%s5454_s1 + $0x120] sm:$0xf]  ;;  %v3433_v11 = vld [vmem:[%s5454_s1 + $0x12c] sm:$0xf0]  ;;  %v2306_v16 = vor.u32 %v3401_v8, %v2305_v7  ;;  %1263 = vmatpush.bf16.msra.mxu2 %v2578_v6  ;;  %v3415_v6 = vld [vmem:[%s5454_s1 + $0xa4] sm:$0xf]  ;;  %v2518_v8 = vor.u32 %v3451_v61, %v2515_v62 }
  0x1b   :  { %v2561_v12 = vld [vmem:[%s5454_s1 + $0x220] sm:$0xf]  ;;  %v3465_v13 = vld [vmem:[%s5454_s1 + $0x22c] sm:$0xf0]  ;;  %v2434_v20 = vor.u32 %v3433_v11, %v2433_v9  ;;  %1276 = vmatpush.bf16.msra.mxu3 %v2706_v10  ;;  %v2371_v7 = vld [vmem:[%s5454_s1 + $0xb0] sm:$0xf0] }
  0x1c   :  { %v2689_v14 = vld [vmem:[%s5454_s1 + $0x320] sm:$0xf]  ;;  %v3497_v15 = vld [vmem:[%s5454_s1 + $0x32c] sm:$0xf0]  ;;  %v2562_v21 = vor.u32 %v3465_v13, %v2561_v12  ;;  %1238 = vmatpush.bf16.msra.mxu0 %v2306_v16  ;;  %v3447_v10 = vld [vmem:[%s5454_s1 + $0x1a4] sm:$0xf]  ;;  %v2374_v13 = vor.u32 %v3415_v6, %v2371_v7 }
  0x1d   :  { %v2289_v17 = vld [vmem:[%s5454_s1] sm:$0xf]  ;;  %v3397_v18 = vld [vmem:[%s5454_s1 + $0xc] sm:$0xf0]  ;;  %v2690_v25 = vor.u32 %v3497_v15, %v2689_v14  ;;  %1251 = vmatpush.bf16.msra.mxu1 %v2434_v20  ;;  %v2499_v11 = vld [vmem:[%s5454_s1 + $0x1b0] sm:$0xf0] }
  0x1e   :  { %v2417_v19 = vld [vmem:[%s5454_s1 + $0x100] sm:$0xf]  ;;  %v3429_v22 = vld [vmem:[%s5454_s1 + $0x10c] sm:$0xf0]  ;;  %v2290_v32 = vor.u32 %v3397_v18, %v2289_v17  ;;  %1264 = vmatpush.bf16.msra.mxu2 %v2562_v21  ;;  %v3411_v18 = vld [vmem:[%s5454_s1 + $0x84] sm:$0xf]  ;;  %v2502_v20 = vor.u32 %v3447_v10, %v2499_v11 }
  0x1f   :  { %v2545_v23 = vld [vmem:[%s5454_s1 + $0x200] sm:$0xf]  ;;  %v3461_v24 = vld [vmem:[%s5454_s1 + $0x20c] sm:$0xf0]  ;;  %v2418_v36 = vor.u32 %v3429_v22, %v2417_v19  ;;  %1277 = vmatpush.bf16.msra.mxu3 %v2690_v25  ;;  %v2355_v19 = vld [vmem:[%s5454_s1 + $0x90] sm:$0xf0] }
  0x20   :  { %v2673_v26 = vld [vmem:[%s5454_s1 + $0x300] sm:$0xf]  ;;  %v3493_v27 = vld [vmem:[%s5454_s1 + $0x30c] sm:$0xf0]  ;;  %v2546_v37 = vor.u32 %v3461_v24, %v2545_v23  ;;  %1239 = vmatpush.bf16.msra.mxu0 %v2290_v32  ;;  %v3443_v22 = vld [vmem:[%s5454_s1 + $0x184] sm:$0xf]  ;;  %v2358_v25 = vor.u32 %v3411_v18, %v2355_v19 }
  0x21   :  { %v2913_v28 = vld [vmem:[%s5454_s1 + $0x4e0] sm:$0xf]  ;;  %v3553_v29 = vld [vmem:[%s5454_s1 + $0x4ec] sm:$0xf0]  ;;  %v2674_v41 = vor.u32 %v3493_v27, %v2673_v26  ;;  %1252 = vmatpush.bf16.msra.mxu1 %v2418_v36  ;;  %v2483_v23 = vld [vmem:[%s5454_s1 + $0x190] sm:$0xf0] }
  0x22   :  { %v3041_v30 = vld [vmem:[%s5454_s1 + $0x5e0] sm:$0xf]  ;;  %v3585_v31 = vld [vmem:[%s5454_s1 + $0x5ec] sm:$0xf0]  ;;  %v2914_v42 = vor.u32 %v3553_v29, %v2913_v28  ;;  %1265 = vmatpush.bf16.msra.mxu2 %v2546_v37  ;;  %v2486_v33 = vor.u32 %v3443_v22, %v2483_v23  ;;  %v2467_v36 = vld [vmem:[%s5454_s1 + $0x170] sm:$0xf0] }
  0x23   :  { %v30_v35 = vld [vmem:[%s5453_s0 + $0x10] sm:$0xff]  ;;  %v3057_v38 = vld [vmem:[%s5454_s1 + $0x600] sm:$0xf]  ;;  %v3042_v46 = vor.u32 %v3585_v31, %v3041_v30  ;;  %1278 = vmatpush.bf16.msra.mxu3 %v2674_v41  ;;  %v3407_v30 = vld [vmem:[%s5454_s1 + $0x64] sm:$0xf] }
  0x24   :  { %v3589_v39 = vld [vmem:[%s5454_s1 + $0x60c] sm:$0xf0]  ;;  %v28_v40 = vld [vmem:[%s5453_s0] sm:$0xff]  ;;  %v3984_v51 = vpack.c.bf16 %v30_v35, %v30_v35  ;;  %1284 = vmatpush.bf16.msrb.mxu0 %v2914_v42  ;;  %1253 = vmatmul.bf16.vlgmr.msra.gmra.mxu1 %v4019_v4  ;;  %v2339_v31 = vld [vmem:[%s5454_s1 + $0x70] sm:$0xf0] }
  0x25   :  { %v2897_v48 = vld [vmem:[%s5454_s1 + $0x4c0] sm:$0xf]  ;;  %v3549_v49 = vld [vmem:[%s5454_s1 + $0x4cc] sm:$0xf0]  ;;  %v3995_v55 = vpack.c.bf16 %v28_v40, %v28_v40  ;;  %v3058_v56 = vor.u32 %v3589_v39, %v3057_v38  ;;  %1297 = vmatpush.bf16.msrb.mxu1 %v3042_v46  ;;  %v3439_v35 = vld [vmem:[%s5454_s1 + $0x164] sm:$0xf]  ;;  %v2342_v38 = vor.u32 %v3407_v30, %v2339_v31 }
  0x26   :  { %v3025_v50 = vld [vmem:[%s5454_s1 + $0x5c0] sm:$0xf]  ;;  %v3581_v52 = vld [vmem:[%s5454_s1 + $0x5cc] sm:$0xf0]  ;;  %v2898_v60 = vor.u32 %v3549_v49, %v2897_v48  ;;  %1266 = vmatmul.bf16.vlgmr.msra.gmra.mxu2 %v3984_v51  ;;  %1279 = vmatmul.bf16.vlgmr.msra.gmra.mxu3 %v3997_v57  ;;  %v2323_v44 = vld [vmem:[%s5454_s1 + $0x50] sm:$0xf0]  ;;  %v2470_v46 = vor.u32 %v3439_v35, %v2467_v36 }
  0x27   :  { %1323 = vmatpush.bf16.msrb.mxu3 %v2406_v47  ;;  %v3026_v63 = vor.u32 %v3581_v52, %v3025_v50  ;;  %v2881_v1 = vld [vmem:[%s5454_s1 + $0x4a0] sm:$0xf]  ;;  %v3545_v2 = vld [vmem:[%s5454_s1 + $0x4ac] sm:$0xf0]  ;;  %1240 = vmatmul.bf16.vlgmr.msra.gmra.mxu0 %v3995_v55  ;;  %v3435_v48 = vld [vmem:[%s5454_s1 + $0x144] sm:$0xf]  ;;  %v2326_v52 = vor.u32 %v3403_v43, %v2323_v44 }
  0x28   :  { %v3009_v3 = vld [vmem:[%s5454_s1 + $0x5a0] sm:$0xf]  ;;  %v3577_v5 = vld [vmem:[%s5454_s1 + $0x5ac] sm:$0xf0]  ;;  %1317 = vmatpush.bf16.msrb.mxu2 %v3058_v56  ;;  %1285 = vmatpush.bf16.msrb.mxu0 %v2898_v60  ;;  %v2882_v9 = vor.u32 %v3545_v2, %v2881_v1  ;;  %v2451_v49 = vld [vmem:[%s5454_s1 + $0x150] sm:$0xf0] }
  0x29   :  { %1298 = vmatpush.bf16.msrb.mxu1 %v3026_v63  ;;  %v3010_v12 = vor.u32 %v3577_v5, %v3009_v3  ;;  %v2865_v14 = vld [vmem:[%s5454_s1 + $0x480] sm:$0xf]  ;;  %v3541_v15 = vld [vmem:[%s5454_s1 + $0x48c] sm:$0xf0]  ;;  %v2307_v60 = vld [vmem:[%s5454_s1 + $0x30] sm:$0xf0]  ;;  %v2454_v61 = vor.u32 %v3435_v48, %v2451_v49 }
  0x2a   :  { %v2993_v16 = vld [vmem:[%s5454_s1 + $0x580] sm:$0xf]  ;;  %v3573_v17 = vld [vmem:[%s5454_s1 + $0x58c] sm:$0xf0]  ;;  %v2866_v21 = vor.u32 %v3541_v15, %v2865_v14  ;;  %v3431_v63 = vld [vmem:[%s5454_s1 + $0x124] sm:$0xf] }
  0x2b   :  { %1324 = vmatpush.bf16.msrb.mxu3 %v2390_v0  ;;  %v2994_v24 = vor.u32 %v3573_v17, %v2993_v16  ;;  %v2849_v26 = vld [vmem:[%s5454_s1 + $0x460] sm:$0xf]  ;;  %v3537_v27 = vld [vmem:[%s5454_s1 + $0x46c] sm:$0xf0]  ;;  %v2435_v0 = vld [vmem:[%s5454_s1 + $0x130] sm:$0xf0] }
  0x2c   :  { %1336 = vmatpush.bf16.msra.mxu2 %v2534_v59  ;;  %1286 = vmatpush.bf16.msrb.mxu0 %v2882_v9  ;;  %v2977_v28 = vld [vmem:[%s5454_s1 + $0x560] sm:$0xf]  ;;  %v3569_v29 = vld [vmem:[%s5454_s1 + $0x56c] sm:$0xf0]  ;;  %v2850_v34 = vor.u32 %v3537_v27, %v2849_v26  ;;  %v3399_v59 = vld [vmem:[%s5454_s1 + $0x24] sm:$0xf]  ;;  %v2438_v14 = vor.u32 %v3431_v63, %v2435_v0 }
  0x2d   :  { %1299 = vmatpush.bf16.msrb.mxu1 %v3010_v12  ;;  %v34_v32 = vld [vmem:[%s5453_s0 + $0x30] sm:$0xff]  ;;  %v2978_v37 = vor.u32 %v3569_v29, %v2977_v28  ;;  %v2833_v39 = vld [vmem:[%s5454_s1 + $0x440] sm:$0xf]  ;;  %v2310_v3 = vor.u32 %v3399_v59, %v2307_v60  ;;  %v3487_v10 = vld [vmem:[%s5454_s1 + $0x2e4] sm:$0xf] }
  0x2e   :  { %v3533_v40 = vld [vmem:[%s5454_s1 + $0x44c] sm:$0xf0]  ;;  %v2961_v41 = vld [vmem:[%s5454_s1 + $0x540] sm:$0xf]  ;;  %v4107_v45 = vpack.c.bf16 %v34_v32, %v34_v32  ;;  %v2291_v9 = vld [vmem:[%s5454_s1 + $0x10] sm:$0xf0] }
  0x2f   :  { %1325 = vmatpush.bf16.msrb.mxu3 %v2374_v13  ;;  %v3565_v42 = vld [vmem:[%s5454_s1 + $0x54c] sm:$0xf0]  ;;  %v2834_v47 = vor.u32 %v3533_v40, %v2833_v39  ;;  %v2817_v53 = vld [vmem:[%s5454_s1 + $0x420] sm:$0xf]  ;;  %v2659_v11 = vld [vmem:[%s5454_s1 + $0x2f0] sm:$0xf0] }
  0x30   :  { %1337 = vmatpush.bf16.msra.mxu2 %v2518_v8  ;;  %1287 = vmatpush.bf16.msrb.mxu0 %v2866_v21  ;;  %v2962_v50 = vor.u32 %v3565_v42, %v2961_v41  ;;  %v3529_v54 = vld [vmem:[%s5454_s1 + $0x42c] sm:$0xf0]  ;;  %v2945_v56 = vld [vmem:[%s5454_s1 + $0x520] sm:$0xf]  ;;  %v3395_v8 = vld [vmem:[%s5454_s1 + $0x4] sm:$0xf] }
  0x31   :  { %1300 = vmatpush.bf16.msrb.mxu1 %v2994_v24  ;;  %v3561_v58 = vld [vmem:[%s5454_s1 + $0x52c] sm:$0xf0]  ;;  %v2818_v62 = vor.u32 %v3529_v54, %v2817_v53  ;;  %v2801_v1 = vld [vmem:[%s5454_s1 + $0x400] sm:$0xf]  ;;  %v3519_v12 = vld [vmem:[%s5454_s1 + $0x3e4] sm:$0xf]  ;;  %v2662_v24 = vor.u32 %v3487_v10, %v2659_v11 }
  0x32   :  { %v2946_v2 = vor.u32 %v3561_v58, %v2945_v56  ;;  %v3525_v5 = vld [vmem:[%s5454_s1 + $0x40c] sm:$0xf0]  ;;  %v2929_v6 = vld [vmem:[%s5454_s1 + $0x500] sm:$0xf]  ;;  %v2787_v13 = vld [vmem:[%s5454_s1 + $0x3f0] sm:$0xf0] }
  0x33   :  { %1326 = vmatpush.bf16.msrb.mxu3 %v2358_v25  ;;  %v3557_v7 = vld [vmem:[%s5454_s1 + $0x50c] sm:$0xf0]  ;;  %v2802_v15 = vor.u32 %v3525_v5, %v2801_v1  ;;  %v3551_v16 = vld [vmem:[%s5454_s1 + $0x4e4] sm:$0xf]  ;;  %v2915_v17 = vld [vmem:[%s5454_s1 + $0x4f0] sm:$0xf0]  ;;  %v2790_v25 = vor.u32 %v3519_v12, %v2787_v13 }
  0x34   :  { %1338 = vmatpush.bf16.msra.mxu2 %v2502_v20  ;;  %1288 = vmatpush.bf16.msrb.mxu0 %v2850_v34  ;;  %v32_v18 = vld [vmem:[%s5453_s0 + $0x20] sm:$0xff]  ;;  %v2930_v19 = vor.u32 %v3557_v7, %v2929_v6  ;;  %v2294_v20 = vor.u32 %v3395_v8, %v2291_v9  ;;  %v2419_v22 = vld [vmem:[%s5454_s1 + $0x110] sm:$0xf0]  ;;  %v33_v23 = vld [vmem:[%s5453_s0 + $0x28] sm:$0xff]  ;;  %v2918_v29 = vor.u32 %v3551_v16, %v2915_v17 }
  0x35   :  { %1301 = vmatpush.bf16.msrb.mxu1 %v2978_v37  ;;  %v3427_v21 = vld [vmem:[%s5454_s1 + $0x104] sm:$0xf]  ;;  %v3043_v27 = vld [vmem:[%s5454_s1 + $0x5f0] sm:$0xf0]  ;;  %v4198_v30 = vpack.c.bf16 %v32_v18, %v32_v18  ;;  %v4209_v35 = vpack.c.bf16 %v33_v23, %v33_v23 }
  0x36   :  { %3071 = vmatmul.msk.bf16.vlgmr.msrb.gmra.mxu2 %vm1228_vm0, %v4107_v45  ;;  %v3583_v26 = vld [vmem:[%s5454_s1 + $0x5e4] sm:$0xf]  ;;  %v2643_v31 = vld [vmem:[%s5454_s1 + $0x2d0] sm:$0xf0]  ;;  %v2422_v34 = vor.u32 %v3427_v21, %v2419_v22 }
  0x37   :  { %1327 = vmatpush.bf16.msrb.mxu3 %v2342_v38  ;;  %v3483_v28 = vld [vmem:[%s5454_s1 + $0x2c4] sm:$0xf]  ;;  %v2899_v37 = vld [vmem:[%s5454_s1 + $0x4d0] sm:$0xf0]  ;;  %v3046_v38 = vor.u32 %v3583_v26, %v3043_v27 }
  0x38   :  { %1339 = vmatpush.bf16.msra.mxu2 %v2486_v33  ;;  %1289 = vmatpush.bf16.msrb.mxu0 %v2834_v47  ;;  %v3515_v32 = vld [vmem:[%s5454_s1 + $0x3c4] sm:$0xf]  ;;  %v2771_v33 = vld [vmem:[%s5454_s1 + $0x3d0] sm:$0xf0]  ;;  %v2646_v39 = vor.u32 %v3483_v28, %v2643_v31 }
  0x39   :  { %1302 = vmatpush.bf16.msrb.mxu1 %v2962_v50  ;;  %v3547_v36 = vld [vmem:[%s5454_s1 + $0x4c4] sm:$0xf]  ;;  %v2774_v40 = vor.u32 %v3515_v32, %v2771_v33  ;;  %v3027_v42 = vld [vmem:[%s5454_s1 + $0x5d0] sm:$0xf0] }
  0x3a   :  { %v3579_v41 = vld [vmem:[%s5454_s1 + $0x5c4] sm:$0xf]  ;;  %v2902_v44 = vor.u32 %v3547_v36, %v2899_v37  ;;  %v2755_v48 = vld [vmem:[%s5454_s1 + $0x3b0] sm:$0xf0] }
  0x3b   :  { %1328 = vmatpush.bf16.msrb.mxu3 %v2326_v52  ;;  %v3479_v43 = vld [vmem:[%s5454_s1 + $0x2a4] sm:$0xf]  ;;  %v2883_v50 = vld [vmem:[%s5454_s1 + $0x4b0] sm:$0xf0]  ;;  %v3030_v52 = vor.u32 %v3579_v41, %v3027_v42 }
  0x3c   :  { %1340 = vmatpush.bf16.msra.mxu2 %v2470_v46  ;;  %1290 = vmatpush.bf16.msrb.mxu0 %v2818_v62  ;;  %v2627_v46 = vld [vmem:[%s5454_s1 + $0x2b0] sm:$0xf0]  ;;  %v3511_v47 = vld [vmem:[%s5454_s1 + $0x3a4] sm:$0xf] }
  0x3d   :  { %1303 = vmatpush.bf16.msrb.mxu1 %v2946_v2  ;;  %v3543_v49 = vld [vmem:[%s5454_s1 + $0x4a4] sm:$0xf]  ;;  %v2630_v53 = vor.u32 %v3479_v43, %v2627_v46  ;;  %v2758_v54 = vor.u32 %v3511_v47, %v2755_v48  ;;  %v3011_v58 = vld [vmem:[%s5454_s1 + $0x5b0] sm:$0xf0] }
  0x3e   :  { %v3575_v56 = vld [vmem:[%s5454_s1 + $0x5a4] sm:$0xf]  ;;  %v2886_v60 = vor.u32 %v3543_v49, %v2883_v50  ;;  %v2739_v63 = vld [vmem:[%s5454_s1 + $0x390] sm:$0xf0] }
  0x3f   :  { %1329 = vmatpush.bf16.msrb.mxu3 %v2310_v3  ;;  %v3475_v59 = vld [vmem:[%s5454_s1 + $0x284] sm:$0xf]  ;;  %v2867_v1 = vld [vmem:[%s5454_s1 + $0x490] sm:$0xf0]  ;;  %v3014_v2 = vor.u32 %v3575_v56, %v3011_v58 }
  0x40   :  { %1341 = vmatpush.bf16.msra.mxu2 %v2454_v61  ;;  %1291 = vmatpush.bf16.msrb.mxu0 %v2802_v15  ;;  %v2611_v61 = vld [vmem:[%s5454_s1 + $0x290] sm:$0xf0]  ;;  %v3507_v62 = vld [vmem:[%s5454_s1 + $0x384] sm:$0xf] }
  0x41   :  { %1304 = vmatpush.bf16.msrb.mxu1 %v2930_v19  ;;  %v3539_v0 = vld [vmem:[%s5454_s1 + $0x484] sm:$0xf]  ;;  %v2614_v3 = vor.u32 %v3475_v59, %v2611_v61  ;;  %v2742_v5 = vor.u32 %v3507_v62, %v2739_v63  ;;  %v2995_v7 = vld [vmem:[%s5454_s1 + $0x590] sm:$0xf0] }
  0x42   :  { %v3571_v6 = vld [vmem:[%s5454_s1 + $0x584] sm:$0xf]  ;;  %v2870_v9 = vor.u32 %v3539_v0, %v2867_v1  ;;  %v2595_v10 = vld [vmem:[%s5454_s1 + $0x270] sm:$0xf0] }
  0x43   :  { %1330 = vmatpush.bf16.msrb.mxu3 %v2294_v20  ;;  %1292 = vmatmul.bf16.vlgmr.msrb.gmra.mxu0 %v4198_v30  ;;  %v3471_v8 = vld [vmem:[%s5454_s1 + $0x264] sm:$0xf]  ;;  %v2723_v12 = vld [vmem:[%s5454_s1 + $0x370] sm:$0xf0]  ;;  %v2998_v15 = vor.u32 %v3571_v6, %v2995_v7 }
  0x44   :  { %1342 = vmatpush.bf16.msra.mxu2 %v2438_v14  ;;  %1349 = vmatpush.bf16.msra.mxu0 %v2662_v24  ;;  %v3503_v11 = vld [vmem:[%s5454_s1 + $0x364] sm:$0xf]  ;;  %v2851_v14 = vld [vmem:[%s5454_s1 + $0x470] sm:$0xf0]  ;;  %v2598_v16 = vor.u32 %v3471_v8, %v2595_v10 }
  0x45   :  { %1362 = vmatpush.bf16.msra.mxu1 %v2790_v25  ;;  %v3535_v13 = vld [vmem:[%s5454_s1 + $0x464] sm:$0xf]  ;;  %v2726_v17 = vor.u32 %v3503_v11, %v2723_v12  ;;  %v2979_v19 = vld [vmem:[%s5454_s1 + $0x570] sm:$0xf0] }
  0x46   :  { %1305 = vmatmul.bf16.vlgmr.msrb.gmra.mxu1 %v4209_v35  ;;  %1331 = vmatmul.bf16.vlgmr.msrb.gmra.mxu3 %v3995_v55  ;;  %v3567_v18 = vld [vmem:[%s5454_s1 + $0x564] sm:$0xf]  ;;  %v2854_v21 = vor.u32 %v3535_v13, %v2851_v14  ;;  %v2579_v22 = vld [vmem:[%s5454_s1 + $0x250] sm:$0xf0] }
  0x47   :  { %1375 = vmatpush.bf16.msra.mxu3 %v2918_v29  ;;  %v3467_v20 = vld [vmem:[%s5454_s1 + $0x244] sm:$0xf]  ;;  %v2707_v24 = vld [vmem:[%s5454_s1 + $0x350] sm:$0xf0]  ;;  %v2982_v27 = vor.u32 %v3567_v18, %v2979_v19 }
  0x48   :  { %1343 = vmatpush.bf16.msra.mxu2 %v2422_v34  ;;  %1350 = vmatpush.bf16.msra.mxu0 %v2646_v39  ;;  %v3499_v23 = vld [vmem:[%s5454_s1 + $0x344] sm:$0xf]  ;;  %v2835_v26 = vld [vmem:[%s5454_s1 + $0x450] sm:$0xf0]  ;;  %v2582_v28 = vor.u32 %v3467_v20, %v2579_v22 }
  0x49   :  { %1363 = vmatpush.bf16.msra.mxu1 %v2774_v40  ;;  %v3531_v25 = vld [vmem:[%s5454_s1 + $0x444] sm:$0xf]  ;;  %v2710_v29 = vor.u32 %v3499_v23, %v2707_v24  ;;  %v2963_v32 = vld [vmem:[%s5454_s1 + $0x550] sm:$0xf0] }
  0x4a   :  { %v3563_v31 = vld [vmem:[%s5454_s1 + $0x544] sm:$0xf]  ;;  %v2838_v34 = vor.u32 %v3531_v25, %v2835_v26  ;;  %v2563_v36 = vld [vmem:[%s5454_s1 + $0x230] sm:$0xf0] }
  0x4b   :  { %1376 = vmatpush.bf16.msra.mxu3 %v2902_v44  ;;  %1344 = vmatmul.bf16.vlgmr.msra.gmra.mxu2 %v4019_v4  ;;  %v3463_v33 = vld [vmem:[%s5454_s1 + $0x224] sm:$0xf]  ;;  %v2819_v40 = vld [vmem:[%s5454_s1 + $0x430] sm:$0xf0]  ;;  %v2966_v42 = vor.u32 %v3563_v31, %v2963_v32 }
  0x4c   :  { %1388 = vmatpush.bf16.msrb.mxu2 %v3046_v38  ;;  %1351 = vmatpush.bf16.msra.mxu0 %v2630_v53  ;;  %v3495_v37 = vld [vmem:[%s5454_s1 + $0x324] sm:$0xf]  ;;  %v2691_v38 = vld [vmem:[%s5454_s1 + $0x330] sm:$0xf0]  ;;  %v2566_v47 = vor.u32 %v3463_v33, %v2563_v36 }
  0x4d   :  { %1364 = vmatpush.bf16.msra.mxu1 %v2758_v54  ;;  %v3527_v39 = vld [vmem:[%s5454_s1 + $0x424] sm:$0xf]  ;;  %v2947_v43 = vld [vmem:[%s5454_s1 + $0x530] sm:$0xf0]  ;;  %v2694_v48 = vor.u32 %v3495_v37, %v2691_v38 }
  0x4e   :  { %v3559_v41 = vld [vmem:[%s5454_s1 + $0x524] sm:$0xf]  ;;  %v2547_v46 = vld [vmem:[%s5454_s1 + $0x210] sm:$0xf0]  ;;  %v2822_v53 = vor.u32 %v3527_v39, %v2819_v40 }
  0x4f   :  { %1377 = vmatpush.bf16.msra.mxu3 %v2886_v60  ;;  %v3459_v44 = vld [vmem:[%s5454_s1 + $0x204] sm:$0xf]  ;;  %v2675_v50 = vld [vmem:[%s5454_s1 + $0x310] sm:$0xf0] }
  0x50   :  { %1389 = vmatpush.bf16.msrb.mxu2 %v3030_v52  ;;  %1352 = vmatpush.bf16.msra.mxu0 %v2614_v3  ;;  %v3491_v49 = vld [vmem:[%s5454_s1 + $0x304] sm:$0xf]  ;;  %v2803_v54 = vld [vmem:[%s5454_s1 + $0x410] sm:$0xf0] }
  0x51   :  { %1365 = vmatpush.bf16.msra.mxu1 %v2742_v5  ;;  %v3523_v52 = vld [vmem:[%s5454_s1 + $0x404] sm:$0xf] }
  0x53   :  { %1378 = vmatpush.bf16.msra.mxu3 %v2870_v9 }
  0x54   :  { %1390 = vmatpush.bf16.msrb.mxu2 %v3014_v2  ;;  %1353 = vmatpush.bf16.msra.mxu0 %v2598_v16 }
  0x55   :  { %1366 = vmatpush.bf16.msra.mxu1 %v2726_v17 }
  0x57   :  { %1379 = vmatpush.bf16.msra.mxu3 %v2854_v21 }
  0x58   :  { %1391 = vmatpush.bf16.msrb.mxu2 %v2998_v15  ;;  %1354 = vmatpush.bf16.msra.mxu0 %v2582_v28 }
  0x59   :  { %1367 = vmatpush.bf16.msra.mxu1 %v2710_v29 }
  0x5b   :  { %1380 = vmatpush.bf16.msra.mxu3 %v2838_v34 }
  0x5c   :  { %1392 = vmatpush.bf16.msrb.mxu2 %v2982_v27 }
  0x5d   :  { %12 = vsyncpa [#allocation3], 0  ;;  %v2409_v56 = vld [vmem:[%s5454_s1 + $0xe8] sm:$0xf]  ;;  %v3426_v58 = vld [vmem:[%s5454_s1 + $0xf4] sm:$0xf0]  ;;  %v2950_v60 = vor.u32 %v3559_v41, %v2947_v43  ;;  %1355 = vmatpush.bf16.msra.mxu0 %v2566_v47  ;;  %1368 = vmatpush.bf16.msra.mxu1 %v2694_v48  ;;  %v2550_v0 = vor.u32 %v3459_v44, %v2547_v46  ;;  %v2678_v1 = vor.u32 %v3491_v49, %v2675_v50 }
  0x5e   :  { %v2537_v59 = vld [vmem:[%s5454_s1 + $0x1e8] sm:$0xf]  ;;  %v3458_v61 = vld [vmem:[%s5454_s1 + $0x1f4] sm:$0xf0]  ;;  %v3587_v62 = vld [vmem:[%s5454_s1 + $0x604] sm:$0xf]  ;;  %v2806_v5 = vor.u32 %v3523_v52, %v2803_v54  ;;  %v2410_v6 = vor.u32 %v3426_v58, %v2409_v56 }
  0x5f   :  { %v3059_v63 = vld [vmem:[%s5454_s1 + $0x610] sm:$0xf0]  ;;  %v3555_v2 = vld [vmem:[%s5454_s1 + $0x504] sm:$0xf]  ;;  %1381 = vmatpush.bf16.msra.mxu3 %v2822_v53  ;;  %v2793_v7 = vld [vmem:[%s5454_s1 + $0x3e8] sm:$0xf]  ;;  %v2538_v10 = vor.u32 %v3458_v61, %v2537_v59 }
  0x60   :  { %1393 = vmatpush.bf16.msrb.mxu2 %v2966_v42  ;;  %v2931_v3 = vld [vmem:[%s5454_s1 + $0x510] sm:$0xf0]  ;;  %v3522_v8 = vld [vmem:[%s5454_s1 + $0x3f4] sm:$0xf0]  ;;  %v2393_v9 = vld [vmem:[%s5454_s1 + $0xc8] sm:$0xf]  ;;  %v3062_v12 = vor.u32 %v3587_v62, %v3059_v63 }
  0x61   :  { %v3422_v11 = vld [vmem:[%s5454_s1 + $0xd4] sm:$0xf0]  ;;  %v2665_v13 = vld [vmem:[%s5454_s1 + $0x2e8] sm:$0xf]  ;;  %v2934_v15 = vor.u32 %v3555_v2, %v2931_v3  ;;  %1356 = vmatpush.bf16.msra.mxu0 %v2550_v0  ;;  %1369 = vmatpush.bf16.msra.mxu1 %v2678_v1  ;;  %v2794_v18 = vor.u32 %v3522_v8, %v2793_v7 }
  0x62   :  { %v3490_v14 = vld [vmem:[%s5454_s1 + $0x2f4] sm:$0xf0]  ;;  %v2521_v16 = vld [vmem:[%s5454_s1 + $0x1c8] sm:$0xf]  ;;  %v2394_v19 = vor.u32 %v3422_v11, %v2393_v9 }
  0x63   :  { %v3454_v17 = vld [vmem:[%s5454_s1 + $0x1d4] sm:$0xf0]  ;;  %1382 = vmatpush.bf16.msra.mxu3 %v2806_v5  ;;  %v2777_v20 = vld [vmem:[%s5454_s1 + $0x3c8] sm:$0xf]  ;;  %v2666_v23 = vor.u32 %v3490_v14, %v2665_v13 }
  0x64   :  { %1394 = vmatpush.bf16.msrb.mxu2 %v2950_v60  ;;  %v3518_v21 = vld [vmem:[%s5454_s1 + $0x3d4] sm:$0xf0]  ;;  %v2377_v22 = vld [vmem:[%s5454_s1 + $0xa8] sm:$0xf]  ;;  %v2522_v24 = vor.u32 %v3454_v17, %v2521_v16  ;;  %1357 = vmatmul.bf16.vlgmr.msra.gmra.mxu0 %v3984_v51 }
  0x65   :  { %1414 = vmatpush.bf16.msrb.mxu1 %v2410_v6  ;;  %1408 = vmatpush.bf16.msrb.mxu0 %v3062_v12  ;;  %v3418_v25 = vld [vmem:[%s5454_s1 + $0xb4] sm:$0xf0]  ;;  %v2649_v26 = vld [vmem:[%s5454_s1 + $0x2c8] sm:$0xf]  ;;  %v2778_v31 = vor.u32 %v3518_v21, %v2777_v20 }
  0x66   :  { %v3486_v27 = vld [vmem:[%s5454_s1 + $0x2d4] sm:$0xf0]  ;;  %v2505_v28 = vld [vmem:[%s5454_s1 + $0x1a8] sm:$0xf]  ;;  %1383 = vmatmul.bf16.vlgmr.msra.gmra.mxu3 %v4198_v30  ;;  %v2378_v32 = vor.u32 %v3418_v25, %v2377_v22  ;;  %1370 = vmatmul.bf16.vlgmr.msra.gmra.mxu1 %v3997_v57 }
  0x67   :  { %1427 = vmatpush.bf16.msrb.mxu3 %v2538_v10  ;;  %v3450_v29 = vld [vmem:[%s5454_s1 + $0x1b4] sm:$0xf0]  ;;  %v2761_v33 = vld [vmem:[%s5454_s1 + $0x3a8] sm:$0xf]  ;;  %v2650_v37 = vor.u32 %v3486_v27, %v2649_v26 }
  0x68   :  { %1395 = vmatpush.bf16.msrb.mxu2 %v2934_v15  ;;  %v3514_v34 = vld [vmem:[%s5454_s1 + $0x3b4] sm:$0xf0]  ;;  %v2361_v36 = vld [vmem:[%s5454_s1 + $0x88] sm:$0xf]  ;;  %v2506_v38 = vor.u32 %v3450_v29, %v2505_v28 }
  0x69   :  { %1415 = vmatpush.bf16.msrb.mxu1 %v2394_v19  ;;  %1440 = vmatpush.bf16.msra.mxu0 %v2666_v23  ;;  %v3414_v39 = vld [vmem:[%s5454_s1 + $0x94] sm:$0xf0]  ;;  %v2633_v40 = vld [vmem:[%s5454_s1 + $0x2a8] sm:$0xf]  ;;  %v2762_v44 = vor.u32 %v3514_v34, %v2761_v33 }
  0x6a   :  { %v3482_v41 = vld [vmem:[%s5454_s1 + $0x2b4] sm:$0xf0]  ;;  %v2489_v42 = vld [vmem:[%s5454_s1 + $0x188] sm:$0xf]  ;;  %v2362_v46 = vor.u32 %v3414_v39, %v2361_v36 }
  0x6b   :  { %1428 = vmatpush.bf16.msrb.mxu3 %v2522_v24  ;;  %1396 = vmatmul.bf16.vlgmr.msrb.gmra.mxu2 %v4209_v35  ;;  %v3446_v43 = vld [vmem:[%s5454_s1 + $0x194] sm:$0xf0]  ;;  %v2745_v47 = vld [vmem:[%s5454_s1 + $0x388] sm:$0xf]  ;;  %v2634_v50 = vor.u32 %v3482_v41, %v2633_v40 }
  0x6c   :  { %1453 = vmatpush.bf16.msra.mxu2 %v2794_v18  ;;  %v3510_v48 = vld [vmem:[%s5454_s1 + $0x394] sm:$0xf0]  ;;  %v2345_v49 = vld [vmem:[%s5454_s1 + $0x68] sm:$0xf]  ;;  %v2490_v52 = vor.u32 %v3446_v43, %v2489_v42 }
  0x6d   :  { %1416 = vmatpush.bf16.msrb.mxu1 %v2378_v32  ;;  %1441 = vmatpush.bf16.msra.mxu0 %v2650_v37  ;;  %v3410_v53 = vld [vmem:[%s5454_s1 + $0x74] sm:$0xf0]  ;;  %v2617_v54 = vld [vmem:[%s5454_s1 + $0x288] sm:$0xf]  ;;  %v2746_v60 = vor.u32 %v3510_v48, %v2745_v47 }
  0x6e   :  { %v3478_v56 = vld [vmem:[%s5454_s1 + $0x294] sm:$0xf0]  ;;  %v2473_v58 = vld [vmem:[%s5454_s1 + $0x168] sm:$0xf]  ;;  %v2346_v61 = vor.u32 %v3410_v53, %v2345_v49 }
  0x6f   :  { %1429 = vmatpush.bf16.msrb.mxu3 %v2506_v38  ;;  %v3442_v59 = vld [vmem:[%s5454_s1 + $0x174] sm:$0xf0]  ;;  %v2729_v62 = vld [vmem:[%s5454_s1 + $0x368] sm:$0xf]  ;;  %v2618_v1 = vor.u32 %v3478_v56, %v2617_v54 }
  0x70   :  { %1454 = vmatpush.bf16.msra.mxu2 %v2778_v31  ;;  %v3506_v63 = vld [vmem:[%s5454_s1 + $0x374] sm:$0xf0]  ;;  %v2329_v0 = vld [vmem:[%s5454_s1 + $0x48] sm:$0xf]  ;;  %v2474_v2 = vor.u32 %v3442_v59, %v2473_v58 }
  0x71   :  { %1417 = vmatpush.bf16.msrb.mxu1 %v2362_v46  ;;  %1442 = vmatpush.bf16.msra.mxu0 %v2634_v50  ;;  %v3406_v3 = vld [vmem:[%s5454_s1 + $0x54] sm:$0xf0]  ;;  %v2601_v5 = vld [vmem:[%s5454_s1 + $0x268] sm:$0xf]  ;;  %v2730_v9 = vor.u32 %v3506_v63, %v2729_v62  ;;  %v2411_v46 = vld [vmem:[%s5454_s1 + $0xf8] sm:$0xf0] }
  0x72   :  { %v3474_v6 = vld [vmem:[%s5454_s1 + $0x274] sm:$0xf0]  ;;  %v2457_v7 = vld [vmem:[%s5454_s1 + $0x148] sm:$0xf]  ;;  %v2330_v10 = vor.u32 %v3406_v3, %v2329_v0  ;;  %v3420_v0 = vld [vmem:[%s5454_s1 + $0xcc] sm:$0xf] }
  0x73   :  { %1430 = vmatpush.bf16.msrb.mxu3 %v2490_v52  ;;  %v3438_v8 = vld [vmem:[%s5454_s1 + $0x154] sm:$0xf0]  ;;  %v2713_v11 = vld [vmem:[%s5454_s1 + $0x348] sm:$0xf]  ;;  %v2602_v14 = vor.u32 %v3474_v6, %v2601_v5  ;;  %v3456_v5 = vld [vmem:[%s5454_s1 + $0x1ec] sm:$0xf] }
  0x74   :  { %1455 = vmatpush.bf16.msra.mxu2 %v2762_v44  ;;  %v3502_v12 = vld [vmem:[%s5454_s1 + $0x354] sm:$0xf0]  ;;  %v2313_v13 = vld [vmem:[%s5454_s1 + $0x28] sm:$0xf]  ;;  %v2458_v15 = vor.u32 %v3438_v8, %v2457_v7  ;;  %3072 = vmatmul.msk.bf16.vlgmr.msrb.gmra.mxu0 %vm1228_vm0, %v4107_v45  ;;  %v3424_v44 = vld [vmem:[%s5454_s1 + $0xec] sm:$0xf] }
  0x75   :  { %1418 = vmatpush.bf16.msrb.mxu1 %v2346_v61  ;;  %1443 = vmatpush.bf16.msra.mxu0 %v2618_v1  ;;  %v3402_v16 = vld [vmem:[%s5454_s1 + $0x34] sm:$0xf0]  ;;  %v2585_v17 = vld [vmem:[%s5454_s1 + $0x248] sm:$0xf]  ;;  %v2714_v21 = vor.u32 %v3502_v12, %v2713_v11  ;;  %v2414_v62 = vor.u32 %v3424_v44, %v2411_v46  ;;  %v2539_v6 = vld [vmem:[%s5454_s1 + $0x1f8] sm:$0xf0] }
  0x76   :  { %v3470_v18 = vld [vmem:[%s5454_s1 + $0x254] sm:$0xf0]  ;;  %v2441_v19 = vld [vmem:[%s5454_s1 + $0x128] sm:$0xf]  ;;  %v2314_v23 = vor.u32 %v3402_v16, %v2313_v13  ;;  %v3416_v13 = vld [vmem:[%s5454_s1 + $0xac] sm:$0xf] }
  0x77   :  { %1431 = vmatpush.bf16.msrb.mxu3 %v2474_v2  ;;  %v3434_v20 = vld [vmem:[%s5454_s1 + $0x134] sm:$0xf0]  ;;  %v2697_v22 = vld [vmem:[%s5454_s1 + $0x328] sm:$0xf]  ;;  %v2586_v27 = vor.u32 %v3470_v18, %v2585_v17  ;;  %v2395_v2 = vld [vmem:[%s5454_s1 + $0xd8] sm:$0xf0] }
  0x78   :  { %1456 = vmatpush.bf16.msra.mxu2 %v2746_v60  ;;  %v3498_v24 = vld [vmem:[%s5454_s1 + $0x334] sm:$0xf0]  ;;  %v2297_v25 = vld [vmem:[%s5454_s1 + $0x8] sm:$0xf]  ;;  %v2442_v28 = vor.u32 %v3434_v20, %v2441_v19  ;;  %v2398_v12 = vor.u32 %v3420_v0, %v2395_v2  ;;  %v2379_v16 = vld [vmem:[%s5454_s1 + $0xb8] sm:$0xf0] }
  0x79   :  { %1419 = vmatpush.bf16.msrb.mxu1 %v2330_v10  ;;  %1444 = vmatpush.bf16.msra.mxu0 %v2602_v14  ;;  %v3398_v26 = vld [vmem:[%s5454_s1 + $0x14] sm:$0xf0]  ;;  %v2425_v29 = vld [vmem:[%s5454_s1 + $0x108] sm:$0xf]  ;;  %v2698_v37 = vor.u32 %v3498_v24, %v2697_v22  ;;  %v2542_v14 = vor.u32 %v3456_v5, %v2539_v6  ;;  %v3452_v17 = vld [vmem:[%s5454_s1 + $0x1cc] sm:$0xf]  ;;  %v2382_v24 = vor.u32 %v3416_v13, %v2379_v16 }
  0x7a   :  { %v2569_v31 = vld [vmem:[%s5454_s1 + $0x228] sm:$0xf]  ;;  %v3466_v32 = vld [vmem:[%s5454_s1 + $0x234] sm:$0xf0]  ;;  %v2298_v41 = vor.u32 %v3398_v26, %v2297_v25  ;;  %v2523_v18 = vld [vmem:[%s5454_s1 + $0x1d8] sm:$0xf0] }
  0x7b   :  { %1432 = vmatpush.bf16.msrb.mxu3 %v2458_v15  ;;  %v3430_v33 = vld [vmem:[%s5454_s1 + $0x114] sm:$0xf0]  ;;  %v2921_v34 = vld [vmem:[%s5454_s1 + $0x4e8] sm:$0xf]  ;;  %v2570_v43 = vor.u32 %v3466_v32, %v2569_v31  ;;  %v3412_v25 = vld [vmem:[%s5454_s1 + $0x8c] sm:$0xf]  ;;  %v2526_v26 = vor.u32 %v3452_v17, %v2523_v18 }
  0x7c   :  { %1457 = vmatpush.bf16.msra.mxu2 %v2730_v9  ;;  %v3554_v36 = vld [vmem:[%s5454_s1 + $0x4f4] sm:$0xf0]  ;;  %v3049_v38 = vld [vmem:[%s5454_s1 + $0x5e8] sm:$0xf]  ;;  %v2426_v47 = vor.u32 %v3430_v33, %v2425_v29  ;;  %v3448_v29 = vld [vmem:[%s5454_s1 + $0x1ac] sm:$0xf] }
  0x7d   :  { %v3586_v39 = vld [vmem:[%s5454_s1 + $0x5f4] sm:$0xf0]  ;;  %v2681_v40 = vld [vmem:[%s5454_s1 + $0x308] sm:$0xf]  ;;  %1420 = vmatpush.bf16.msrb.mxu1 %v2314_v23  ;;  %1445 = vmatpush.bf16.msra.mxu0 %v2586_v27  ;;  %v2922_v48 = vor.u32 %v3554_v36, %v2921_v34  ;;  %v2507_v31 = vld [vmem:[%s5454_s1 + $0x1b8] sm:$0xf0] }
  0x7e   :  { %v3494_v42 = vld [vmem:[%s5454_s1 + $0x314] sm:$0xf0]  ;;  %v2905_v49 = vld [vmem:[%s5454_s1 + $0x4c8] sm:$0xf]  ;;  %v3050_v53 = vor.u32 %v3586_v39, %v3049_v38  ;;  %v3408_v39 = vld [vmem:[%s5454_s1 + $0x6c] sm:$0xf] }
  0x7f   :  { %1433 = vmatpush.bf16.msrb.mxu3 %v2442_v28  ;;  %v2553_v50 = vld [vmem:[%s5454_s1 + $0x208] sm:$0xf]  ;;  %v3462_v52 = vld [vmem:[%s5454_s1 + $0x214] sm:$0xf0]  ;;  %v2682_v59 = vor.u32 %v3494_v42, %v2681_v40  ;;  %v2363_v28 = vld [vmem:[%s5454_s1 + $0x98] sm:$0xf0]  ;;  %v2510_v40 = vor.u32 %v3448_v29, %v2507_v31 }
  0x80   :  { %1458 = vmatpush.bf16.msra.mxu2 %v2714_v21  ;;  %v3550_v54 = vld [vmem:[%s5454_s1 + $0x4d4] sm:$0xf0]  ;;  %v3065_v56 = vld [vmem:[%s5454_s1 + $0x608] sm:$0xf]  ;;  %v2554_v63 = vor.u32 %v3462_v52, %v2553_v50  ;;  %v2366_v38 = vor.u32 %v3412_v25, %v2363_v28  ;;  %v2347_v42 = vld [vmem:[%s5454_s1 + $0x78] sm:$0xf0] }
  0x81   :  { %v3590_v58 = vld [vmem:[%s5454_s1 + $0x614] sm:$0xf0]  ;;  %v3033_v60 = vld [vmem:[%s5454_s1 + $0x5c8] sm:$0xf]  ;;  %1421 = vmatpush.bf16.msrb.mxu1 %v2298_v41  ;;  %1446 = vmatpush.bf16.msra.mxu0 %v2570_v43  ;;  %v2906_v1 = vor.u32 %v3550_v54, %v2905_v49  ;;  %v3444_v43 = vld [vmem:[%s5454_s1 + $0x18c] sm:$0xf]  ;;  %v2350_v52 = vor.u32 %v3408_v39, %v2347_v42 }
  0x82   :  { %v3582_v61 = vld [vmem:[%s5454_s1 + $0x5d4] sm:$0xf0]  ;;  %v3066_v3 = vor.u32 %v3590_v58, %v3065_v56  ;;  %v2889_v8 = vld [vmem:[%s5454_s1 + $0x4a8] sm:$0xf]  ;;  %v2491_v44 = vld [vmem:[%s5454_s1 + $0x198] sm:$0xf0] }
  0x83   :  { %1434 = vmatpush.bf16.msrb.mxu3 %v2426_v47  ;;  %v3034_v7 = vor.u32 %v3582_v61, %v3033_v60  ;;  %v3546_v9 = vld [vmem:[%s5454_s1 + $0x4b4] sm:$0xf0]  ;;  %v3017_v10 = vld [vmem:[%s5454_s1 + $0x5a8] sm:$0xf]  ;;  %v2494_v54 = vor.u32 %v3444_v43, %v2491_v44  ;;  %v2331_v58 = vld [vmem:[%s5454_s1 + $0x58] sm:$0xf0] }
  0x84   :  { %1459 = vmatpush.bf16.msra.mxu2 %v2698_v37  ;;  %v3578_v11 = vld [vmem:[%s5454_s1 + $0x5b4] sm:$0xf0]  ;;  %1422 = vmatmul.bf16.vlgmr.msrb.gmra.mxu1 %v3995_v55  ;;  %v2890_v15 = vor.u32 %v3546_v9, %v2889_v8  ;;  %v2873_v20 = vld [vmem:[%s5454_s1 + $0x488] sm:$0xf]  ;;  %v2475_v60 = vld [vmem:[%s5454_s1 + $0x178] sm:$0xf0] }
  0x85   :  { %1466 = vmatpush.bf16.msra.mxu1 %v2922_v48  ;;  %1447 = vmatpush.bf16.msra.mxu0 %v2554_v63  ;;  %v3018_v19 = vor.u32 %v3578_v11, %v3017_v10  ;;  %v3542_v21 = vld [vmem:[%s5454_s1 + $0x494] sm:$0xf0]  ;;  %v3001_v22 = vld [vmem:[%s5454_s1 + $0x588] sm:$0xf]  ;;  %v3436_v8 = vld [vmem:[%s5454_s1 + $0x14c] sm:$0xf] }
  0x86   :  { %v3574_v23 = vld [vmem:[%s5454_s1 + $0x594] sm:$0xf0]  ;;  %1435 = vmatmul.bf16.vlgmr.msrb.gmra.mxu3 %v4019_v4  ;;  %v2874_v27 = vor.u32 %v3542_v21, %v2873_v20  ;;  %v2857_v33 = vld [vmem:[%s5454_s1 + $0x468] sm:$0xf]  ;;  %v2459_v9 = vld [vmem:[%s5454_s1 + $0x158] sm:$0xf0] }
  0x87   :  { %1479 = vmatpush.bf16.msra.mxu3 %v3050_v53  ;;  %v3002_v32 = vor.u32 %v3574_v23, %v3001_v22  ;;  %v3538_v34 = vld [vmem:[%s5454_s1 + $0x474] sm:$0xf0]  ;;  %v2985_v36 = vld [vmem:[%s5454_s1 + $0x568] sm:$0xf]  ;;  %v3404_v53 = vld [vmem:[%s5454_s1 + $0x4c] sm:$0xf]  ;;  %v2462_v20 = vor.u32 %v3436_v8, %v2459_v9 }
  0x88   :  { %1460 = vmatpush.bf16.msra.mxu2 %v2682_v59  ;;  %1448 = vmatmul.bf16.vlgmr.msra.gmra.mxu0 %v3984_v51  ;;  %v3570_v37 = vld [vmem:[%s5454_s1 + $0x574] sm:$0xf0]  ;;  %v2858_v41 = vor.u32 %v3538_v34, %v2857_v33  ;;  %v2841_v47 = vld [vmem:[%s5454_s1 + $0x448] sm:$0xf]  ;;  %v3440_v59 = vld [vmem:[%s5454_s1 + $0x16c] sm:$0xf]  ;;  %v2334_v2 = vor.u32 %v3404_v53, %v2331_v58 }
  0x89   :  { %1467 = vmatpush.bf16.msra.mxu1 %v2906_v1  ;;  %1499 = vmatpush.bf16.msrb.mxu0 %v3066_v3  ;;  %v2986_v46 = vor.u32 %v3570_v37, %v2985_v36  ;;  %v3534_v48 = vld [vmem:[%s5454_s1 + $0x454] sm:$0xf0]  ;;  %v2969_v49 = vld [vmem:[%s5454_s1 + $0x548] sm:$0xf]  ;;  %v3400_v3 = vld [vmem:[%s5454_s1 + $0x2c] sm:$0xf]  ;;  %v2478_v5 = vor.u32 %v3440_v59, %v2475_v60 }
  0x8a   :  { %v3566_v50 = vld [vmem:[%s5454_s1 + $0x554] sm:$0xf0]  ;;  %v2842_v56 = vor.u32 %v3534_v48, %v2841_v47  ;;  %v2953_v0 = vld [vmem:[%s5454_s1 + $0x528] sm:$0xf]  ;;  %v2667_v16 = vld [vmem:[%s5454_s1 + $0x2f8] sm:$0xf0] }
  0x8b   :  { %1480 = vmatpush.bf16.msra.mxu3 %v3034_v7  ;;  %1461 = vmatmul.bf16.vlgmr.msra.gmra.mxu2 %v3997_v57  ;;  %v2970_v61 = vor.u32 %v3566_v50, %v2969_v49  ;;  %v3530_v63 = vld [vmem:[%s5454_s1 + $0x434] sm:$0xf0]  ;;  %v2315_v7 = vld [vmem:[%s5454_s1 + $0x38] sm:$0xf0]  ;;  %v2809_v11 = vld [vmem:[%s5454_s1 + $0x408] sm:$0xf] }
  0x8c   :  { %1505 = vmatpush.bf16.msrb.mxu2 %v2414_v62  ;;  %v2825_v62 = vld [vmem:[%s5454_s1 + $0x428] sm:$0xf]  ;;  %v3562_v1 = vld [vmem:[%s5454_s1 + $0x534] sm:$0xf0]  ;;  %v2318_v17 = vor.u32 %v3400_v3, %v2315_v7  ;;  %v3520_v18 = vld [vmem:[%s5454_s1 + $0x3ec] sm:$0xf] }
  0x8d   :  { %1518 = vmatpush.bf16.msra.mxu0 %v2542_v14  ;;  %1468 = vmatpush.bf16.msra.mxu1 %v2890_v15  ;;  %v2826_v6 = vor.u32 %v3530_v63, %v2825_v62  ;;  %v2954_v10 = vor.u32 %v3562_v1, %v2953_v0  ;;  %v2937_v13 = vld [vmem:[%s5454_s1 + $0x508] sm:$0xf]  ;;  %v3558_v14 = vld [vmem:[%s5454_s1 + $0x514] sm:$0xf0]  ;;  %v3488_v15 = vld [vmem:[%s5454_s1 + $0x2ec] sm:$0xf] }
  0x8e   :  { %v3396_v22 = vld [vmem:[%s5454_s1 + $0xc] sm:$0xf]  ;;  %v2299_v23 = vld [vmem:[%s5454_s1 + $0x18] sm:$0xf0]  ;;  %v2670_v25 = vor.u32 %v3488_v15, %v2667_v16 }
  0x8f   :  { %1481 = vmatpush.bf16.msra.mxu3 %v3018_v19  ;;  %v2795_v19 = vld [vmem:[%s5454_s1 + $0x3f8] sm:$0xf0]  ;;  %v3484_v28 = vld [vmem:[%s5454_s1 + $0x2cc] sm:$0xf]  ;;  %v2302_v34 = vor.u32 %v3396_v22, %v2299_v23 }
  0x90   :  { %1506 = vmatpush.bf16.msrb.mxu2 %v2398_v12  ;;  %v3526_v12 = vld [vmem:[%s5454_s1 + $0x414] sm:$0xf0]  ;;  %v2798_v29 = vor.u32 %v3520_v18, %v2795_v19  ;;  %v2651_v31 = vld [vmem:[%s5454_s1 + $0x2d8] sm:$0xf0]  ;;  %v3516_v36 = vld [vmem:[%s5454_s1 + $0x3cc] sm:$0xf] }
  0x91   :  { %1519 = vmatpush.bf16.msra.mxu0 %v2526_v26  ;;  %1469 = vmatpush.bf16.msra.mxu1 %v2874_v27  ;;  %v2810_v21 = vor.u32 %v3526_v12, %v2809_v11  ;;  %v3552_v26 = vld [vmem:[%s5454_s1 + $0x4ec] sm:$0xf]  ;;  %v2923_v27 = vld [vmem:[%s5454_s1 + $0x4f8] sm:$0xf0] }
  0x92   :  { %v2443_v33 = vld [vmem:[%s5454_s1 + $0x138] sm:$0xf0]  ;;  %v3548_v39 = vld [vmem:[%s5454_s1 + $0x4cc] sm:$0xf] }
  0x93   :  { %1482 = vmatpush.bf16.msra.mxu3 %v3002_v32  ;;  %v3432_v32 = vld [vmem:[%s5454_s1 + $0x12c] sm:$0xf]  ;;  %v2779_v37 = vld [vmem:[%s5454_s1 + $0x3d8] sm:$0xf0] }
  0x94   :  { %1507 = vmatpush.bf16.msrb.mxu2 %v2382_v24  ;;  %v2938_v24 = vor.u32 %v3558_v14, %v2937_v13  ;;  %v2907_v42 = vld [vmem:[%s5454_s1 + $0x4d8] sm:$0xf0]  ;;  %v3480_v43 = vld [vmem:[%s5454_s1 + $0x2ac] sm:$0xf] }
  0x95   :  { %1520 = vmatpush.bf16.msra.mxu0 %v2510_v40  ;;  %1470 = vmatpush.bf16.msra.mxu1 %v2858_v41  ;;  %v2654_v40 = vor.u32 %v3484_v28, %v2651_v31  ;;  %v2446_v41 = vor.u32 %v3432_v32, %v2443_v33  ;;  %v2635_v44 = vld [vmem:[%s5454_s1 + $0x2b8] sm:$0xf0]  ;;  %v3512_v47 = vld [vmem:[%s5454_s1 + $0x3ac] sm:$0xf] }
  0x96   :  { %v3428_v48 = vld [vmem:[%s5454_s1 + $0x10c] sm:$0xf]  ;;  %v2427_v49 = vld [vmem:[%s5454_s1 + $0x118] sm:$0xf0] }
  0x97   :  { %1483 = vmatpush.bf16.msra.mxu3 %v2986_v46  ;;  %v2782_v46 = vor.u32 %v3516_v36, %v2779_v37  ;;  %v2763_v50 = vld [vmem:[%s5454_s1 + $0x3b8] sm:$0xf0]  ;;  %v2430_v58 = vor.u32 %v3428_v48, %v2427_v49  ;;  %v3544_v59 = vld [vmem:[%s5454_s1 + $0x4ac] sm:$0xf]  ;;  %v4944_v49 = vld [vmem:[%s5455_s2] sm:$0xf] }
  0x98   :  { %1508 = vmatpush.bf16.msrb.mxu2 %v2366_v38  ;;  %3073 = vmatmul.msk.bf16.vlgmr.msrb.gmra.mxu0 %vm1228_vm0, %v4107_v45  ;;  %v2926_v38 = vor.u32 %v3552_v26, %v2923_v27  ;;  %v3051_v53 = vld [vmem:[%s5454_s1 + $0x5f8] sm:$0xf0]  ;;  %v3476_v63 = vld [vmem:[%s5454_s1 + $0x28c] sm:$0xf] }
  0x99   :  { %1521 = vmatpush.bf16.msra.mxu0 %v2494_v54  ;;  %1471 = vmatpush.bf16.msra.mxu1 %v2842_v56  ;;  %v2910_v54 = vor.u32 %v3548_v39, %v2907_v42  ;;  %v2638_v56 = vor.u32 %v3480_v43, %v2635_v44  ;;  %v2891_v60 = vld [vmem:[%s5454_s1 + $0x4b8] sm:$0xf0]  ;;  %v3508_v1 = vld [vmem:[%s5454_s1 + $0x38c] sm:$0xf] }
  0x9a   :  { %v2619_v0 = vld [vmem:[%s5454_s1 + $0x298] sm:$0xf0]  ;;  %v3540_v7 = vld [vmem:[%s5454_s1 + $0x48c] sm:$0xf] }
  0x9b   :  { %1484 = vmatpush.bf16.msra.mxu3 %v2970_v61  ;;  %v2766_v61 = vor.u32 %v3512_v47, %v2763_v50  ;;  %v3035_v3 = vld [vmem:[%s5454_s1 + $0x5d8] sm:$0xf0]  ;;  %v3472_v11 = vld [vmem:[%s5454_s1 + $0x26c] sm:$0xf] }
  0x9c   :  { %1509 = vmatpush.bf16.msrb.mxu2 %v2350_v52  ;;  %v3584_v52 = vld [vmem:[%s5454_s1 + $0x5ec] sm:$0xf]  ;;  %v2875_v8 = vld [vmem:[%s5454_s1 + $0x498] sm:$0xf0] }
  0x9d   :  { %1522 = vmatpush.bf16.msra.mxu0 %v2478_v5  ;;  %1472 = vmatpush.bf16.msra.mxu1 %v2826_v6  ;;  %v3054_v62 = vor.u32 %v3584_v52, %v3051_v53  ;;  %v2894_v5 = vor.u32 %v3544_v59, %v2891_v60  ;;  %v2622_v6 = vor.u32 %v3476_v63, %v2619_v0  ;;  %v2603_v12 = vld [vmem:[%s5454_s1 + $0x278] sm:$0xf0]  ;;  %v3504_v13 = vld [vmem:[%s5454_s1 + $0x36c] sm:$0xf] }
  0x9e   :  { %v2731_v15 = vld [vmem:[%s5454_s1 + $0x378] sm:$0xf0]  ;;  %v3576_v16 = vld [vmem:[%s5454_s1 + $0x5ac] sm:$0xf]  ;;  %v2878_v18 = vor.u32 %v3540_v7, %v2875_v8  ;;  %v2606_v19 = vor.u32 %v3472_v11, %v2603_v12 }
  0x9f   :  { %1485 = vmatpush.bf16.msra.mxu3 %v2954_v10  ;;  %v2734_v22 = vor.u32 %v3504_v13, %v2731_v15  ;;  %v2715_v27 = vld [vmem:[%s5454_s1 + $0x358] sm:$0xf0]  ;;  %v3572_v28 = vld [vmem:[%s5454_s1 + $0x58c] sm:$0xf] }
  0xa0   :  { %1510 = vmatpush.bf16.msrb.mxu2 %v2334_v2  ;;  %v2747_v2 = vld [vmem:[%s5454_s1 + $0x398] sm:$0xf0]  ;;  %v3496_v42 = vld [vmem:[%s5454_s1 + $0x32c] sm:$0xf] }
  0xa1   :  { %1523 = vmatpush.bf16.msra.mxu0 %v2462_v20  ;;  %1473 = vmatpush.bf16.msra.mxu1 %v2810_v21  ;;  %v2750_v9 = vor.u32 %v3508_v1, %v2747_v2  ;;  %v3536_v20 = vld [vmem:[%s5454_s1 + $0x46c] sm:$0xf]  ;;  %v2859_v21 = vld [vmem:[%s5454_s1 + $0x478] sm:$0xf0]  ;;  %v4902_v26 = vpop.f32.mrf.mxu1 }
  0xa2   :  { %v2862_v31 = vor.u32 %v3536_v20, %v2859_v21  ;;  %v2843_v36 = vld [vmem:[%s5454_s1 + $0x458] sm:$0xf0]  ;;  %v3568_v44 = vld [vmem:[%s5454_s1 + $0x56c] sm:$0xf] }
  0xa3   :  { %1486 = vmatpush.bf16.msra.mxu3 %v2938_v24  ;;  %v3468_v24 = vld [vmem:[%s5454_s1 + $0x24c] sm:$0xf]  ;;  %v2699_v43 = vld [vmem:[%s5454_s1 + $0x338] sm:$0xf0] }
  0xa4   :  { %1511 = vmatpush.bf16.msrb.mxu2 %v2318_v17  ;;  %1474 = vmatmul.bf16.vlgmr.msra.gmra.mxu1 %v4198_v30  ;;  %v4875_v14 = vpop.f32.mrf.mxu0  ;;  %v3019_v17 = vld [vmem:[%s5454_s1 + $0x5b8] sm:$0xf0]  ;;  %v3528_v52 = vld [vmem:[%s5454_s1 + $0x42c] sm:$0xf] }
  0xa5   :  { %1531 = vmatpush.bf16.msrb.mxu1 %v2670_v25  ;;  %1524 = vmatpush.bf16.msra.mxu0 %v2446_v41  ;;  %v3022_v23 = vor.u32 %v3576_v16, %v3019_v17  ;;  %v3500_v25 = vld [vmem:[%s5454_s1 + $0x34c] sm:$0xf]  ;;  %v2571_v41 = vld [vmem:[%s5454_s1 + $0x238] sm:$0xf0] }
  0xa6   :  { %1487 = vmatmul.bf16.vlgmr.msra.gmra.mxu3 %v4209_v35  ;;  %v2827_v53 = vld [vmem:[%s5454_s1 + $0x438] sm:$0xf0]  ;;  %v3492_v60 = vld [vmem:[%s5454_s1 + $0x30c] sm:$0xf] }
  0xa7   :  { %1544 = vmatpush.bf16.msrb.mxu3 %v2798_v29  ;;  %v3003_v29 = vld [vmem:[%s5454_s1 + $0x598] sm:$0xf0]  ;;  %v3564_v63 = vld [vmem:[%s5454_s1 + $0x54c] sm:$0xf]  ;;  %v2830_v2 = vor.u32 %v3528_v52, %v2827_v53  ;;  %v3598_v52 = vld [vmem:[%s5456_s3 + $0x34] sm:$0xf0] }
  0xa8   :  { %1512 = vmatpush.bf16.msrb.mxu2 %v2302_v34  ;;  %v3532_v34 = vld [vmem:[%s5454_s1 + $0x44c] sm:$0xf]  ;;  %v3006_v39 = vor.u32 %v3572_v28, %v3003_v29  ;;  %v2555_v59 = vld [vmem:[%s5454_s1 + $0x218] sm:$0xf0] }
  0xa9   :  { %1532 = vmatpush.bf16.msrb.mxu1 %v2654_v40  ;;  %1525 = vmatpush.bf16.msra.mxu0 %v2430_v58  ;;  %v4913_v32 = vpop.f32.mrf.mxu2  ;;  %v4921_v37 = vpop.f32.mrf.mxu3  ;;  %v3464_v40 = vld [vmem:[%s5454_s1 + $0x22c] sm:$0xf]  ;;  %v2846_v48 = vor.u32 %v3532_v34, %v2843_v36  ;;  %v2971_v0 = vld [vmem:[%s5454_s1 + $0x558] sm:$0xf0]  ;;  %v3602_v34 = vld [vmem:[%s5456_s3 + $0x54] sm:$0xf0] }
  0xaa   :  { %v2574_v50 = vor.u32 %v3464_v40, %v2571_v41  ;;  %v1256_v1 = vpop.f32.mrf.mxu1  ;;  %v3524_v8 = vld [vmem:[%s5454_s1 + $0x40c] sm:$0xf]  ;;  %v2974_v12 = vor.u32 %v3564_v63, %v2971_v0  ;;  %v3067_v15 = vld [vmem:[%s5454_s1 + $0x618] sm:$0xf0]  ;;  %v3157_v0 = vld [vmem:[%s5456_s3 + $0xa0] sm:$0xf] }
  0xab   :  { %1545 = vmatpush.bf16.msrb.mxu3 %v2782_v46  ;;  %1513 = vmatmul.bf16.vlgmr.msrb.gmra.mxu2 %v3995_v55  ;;  %v3580_v55 = vld [vmem:[%s5454_s1 + $0x5cc] sm:$0xf]  ;;  %v2987_v46 = vld [vmem:[%s5454_s1 + $0x578] sm:$0xf0] }
  0xac   :  { %1557 = vmatpush.bf16.msra.mxu2 %v2926_v38  ;;  %v3038_v10 = vor.u32 %v3580_v55, %v3035_v3  ;;  %1526 = vmatmul.bf16.vlgmr.msra.gmra.mxu0 %v4019_v4  ;;  %v2587_v4 = vld [vmem:[%s5454_s1 + $0x258] sm:$0xf0]  ;;  %v2718_v38 = vor.u32 %v3500_v25, %v2715_v27  ;;  %v1243_v47 = vpop.f32.mrf.mxu0  ;;  %v2990_v58 = vor.u32 %v3568_v44, %v2987_v46  ;;  %v3606_v55 = vld [vmem:[%s5456_s3 + $0x74] sm:$0xf0]  ;;  %v3197_v3 = vld [vmem:[%s5456_s3 + $0xf0] sm:$0xf] }
  0xad   :  { %1533 = vmatpush.bf16.msrb.mxu1 %v2638_v56  ;;  %1570 = vmatpush.bf16.msrb.mxu0 %v3054_v62  ;;  %v2590_v33 = vor.u32 %v3468_v24, %v2587_v4  ;;  %v2702_v56 = vor.u32 %v3496_v42, %v2699_v43  ;;  %v3133_v62 = vld [vmem:[%s5456_s3 + $0x70] sm:$0xf]  ;;  %v3588_v13 = vld [vmem:[%s5454_s1 + $0x60c] sm:$0xf]  ;;  %v3189_v4 = vld [vmem:[%s5456_s3 + $0xe0] sm:$0xf] }
  0xae   :  { %v3134_v17 = vor.u32 %v3606_v55, %v3133_v62  ;;  %v3070_v24 = vor.u32 %v3588_v13, %v3067_v15  ;;  %v3620_v25 = vld [vmem:[%s5456_s3 + $0xe4] sm:$0xf0]  ;;  %v3093_v62 = vld [vmem:[%s5456_s3 + $0x20] sm:$0xf]  ;;  %v3085_v55 = vld [vmem:[%s5456_s3 + $0x10] sm:$0xf] }
  0xaf   :  { %1546 = vmatpush.bf16.msrb.mxu3 %v2766_v61  ;;  %v2683_v61 = vld [vmem:[%s5454_s1 + $0x318] sm:$0xf0]  ;;  %v3190_v36 = vor.u32 %v3620_v25, %v3189_v4  ;;  %v3600_v43 = vld [vmem:[%s5456_s3 + $0x44] sm:$0xf0]  ;;  %v3077_v15 = vld [vmem:[%s5456_s3] sm:$0xf] }
  0xb0   :  { %1558 = vmatpush.bf16.msra.mxu2 %v2910_v54  ;;  %v3460_v54 = vld [vmem:[%s5454_s1 + $0x20c] sm:$0xf]  ;;  %v2686_v11 = vor.u32 %v3492_v60, %v2683_v61  ;;  %v3616_v46 = vld [vmem:[%s5456_s3 + $0xc4] sm:$0xf0] }
  0xb1   :  { %1534 = vmatpush.bf16.msrb.mxu1 %v2622_v6  ;;  %1571 = vmatpush.bf16.msrb.mxu0 %v3038_v10  ;;  %v1269_v6 = vpop.f32.mrf.mxu2  ;;  %v2558_v7 = vor.u32 %v3460_v54, %v2555_v59  ;;  %v240_v10 = vperm.slane %v4944_v49, 0  ;;  %v1282_v16 = vpop.f32.mrf.mxu3 }
  0xb2   :  { %v3592_v16 = vld [vmem:[%s5456_s3 + $0x4] sm:$0xf0] }
  0xb3   :  { %1547 = vmatpush.bf16.msrb.mxu3 %v2750_v9  ;;  %v2811_v9 = vld [vmem:[%s5454_s1 + $0x418] sm:$0xf0]  ;;  %v1242_v27 = vadd.f32 %v4875_v14, %v240_v10  ;;  %v3117_v14 = vld [vmem:[%s5456_s3 + $0x50] sm:$0xf]  ;;  %v3610_v10 = vld [vmem:[%s5456_s3 + $0x94] sm:$0xf0] }
  0xb4   :  { %1559 = vmatpush.bf16.msra.mxu2 %v2894_v5  ;;  %v3622_v5 = vld [vmem:[%s5456_s3 + $0xf4] sm:$0xf0]  ;;  %v2814_v21 = vor.u32 %v3524_v8, %v2811_v9  ;;  %v3118_v42 = vor.u32 %v3602_v34, %v3117_v14  ;;  %v3149_v9 = vld [vmem:[%s5456_s3 + $0x90] sm:$0xf]  ;;  %v3619_v14 = vld [vmem:[%s5456_s3 + $0xe4] sm:$0xf] }
  0xb5   :  { %1535 = vmatpush.bf16.msrb.mxu1 %v2606_v19  ;;  %1572 = vmatpush.bf16.msrb.mxu0 %v3022_v23  ;;  %v2955_v19 = vld [vmem:[%s5454_s1 + $0x538] sm:$0xf0]  ;;  %v3198_v20 = vor.u32 %v3622_v5, %v3197_v3  ;;  %v3604_v23 = vld [vmem:[%s5456_s3 + $0x64] sm:$0xf0]  ;;  %v1255_v40 = vadd.f32 %v4902_v26, %v1242_v27  ;;  %v3173_v26 = vld [vmem:[%s5456_s3 + $0xc0] sm:$0xf] }
  0xb6   :  { %v3174_v53 = vor.u32 %v3616_v46, %v3173_v26  ;;  %v3594_v3 = vld [vmem:[%s5456_s3 + $0x14] sm:$0xf0]  ;;  %v3191_v34 = vld [vmem:[%s5456_s3 + $0xe8] sm:$0xf0] }
  0xb7   :  { %1548 = vmatpush.bf16.msrb.mxu3 %v2734_v22  ;;  %v3125_v22 = vld [vmem:[%s5456_s3 + $0x60] sm:$0xf] }
  0xb8   :  { %1560 = vmatpush.bf16.msra.mxu2 %v2878_v18  ;;  %v3560_v18 = vld [vmem:[%s5454_s1 + $0x52c] sm:$0xf]  ;;  %v3126_v29 = vor.u32 %v3604_v23, %v3125_v22  ;;  %v3199_v22 = vld [vmem:[%s5456_s3 + $0xf8] sm:$0xf0]  ;;  %v3078_v23 = vor.u32 %v3592_v16, %v3077_v15 }
  0xb9   :  { %1536 = vmatpush.bf16.msrb.mxu1 %v2590_v33  ;;  %1573 = vmatpush.bf16.msrb.mxu0 %v3006_v39  ;;  %v2958_v28 = vor.u32 %v3560_v18, %v2955_v19  ;;  %v2939_v33 = vld [vmem:[%s5454_s1 + $0x518] sm:$0xf0]  ;;  %v3181_v39 = vld [vmem:[%s5456_s3 + $0xd0] sm:$0xf]  ;;  %v3150_v18 = vor.u32 %v3610_v10, %v3149_v9  ;;  %v3141_v19 = vld [vmem:[%s5456_s3 + $0x80] sm:$0xf] }
  0xba   :  { %v3611_v9 = vld [vmem:[%s5456_s3 + $0xa4] sm:$0xf]  ;;  %v3159_v10 = vld [vmem:[%s5456_s3 + $0xa8] sm:$0xf0]  ;;  %v3087_v15 = vld [vmem:[%s5456_s3 + $0x18] sm:$0xf0] }
  0xbb   :  { %1549 = vmatpush.bf16.msrb.mxu3 %v2718_v38  ;;  %v1319_v38 = vpop.f32.mrf.mxu2 }
  0xbc   :  { %1561 = vmatpush.bf16.msra.mxu2 %v2862_v31  ;;  %v3556_v31 = vld [vmem:[%s5454_s1 + $0x50c] sm:$0xf] }
  0xbd   :  { %1537 = vmatpush.bf16.msrb.mxu1 %v2574_v50  ;;  %1574 = vmatpush.bf16.msrb.mxu0 %v2990_v58  ;;  %v2942_v41 = vor.u32 %v3556_v31, %v2939_v33  ;;  %v3101_v50 = vld [vmem:[%s5456_s3 + $0x30] sm:$0xf]  ;;  %v3614_v58 = vld [vmem:[%s5456_s3 + $0xb4] sm:$0xf0] }
  0xbe   :  { %v3102_v60 = vor.u32 %v3598_v52, %v3101_v50  ;;  %v3599_v50 = vld [vmem:[%s5456_s3 + $0x44] sm:$0xf]  ;;  %v3111_v52 = vld [vmem:[%s5456_s3 + $0x48] sm:$0xf0] }
  0xbf   :  { %1550 = vmatpush.bf16.msrb.mxu3 %v2702_v56 }
  0xc0   :  { %1562 = vmatpush.bf16.msra.mxu2 %v2846_v48  ;;  %v1293_v48 = vpop.f32.mrf.mxu0 }
  0xc1   :  { %1538 = vmatpush.bf16.msrb.mxu1 %v2558_v7  ;;  %1575 = vmatpush.bf16.msrb.mxu0 %v2974_v12  ;;  %v3086_v12 = vor.u32 %v3594_v3, %v3085_v55 }
  0xc3   :  { %1551 = vmatpush.bf16.msrb.mxu3 %v2686_v11  ;;  %v1306_v54 = vpop.f32.mrf.mxu1  ;;  %v1321_v56 = vpop.f32.mrf.mxu2 }
  0xc4   :  { %1563 = vmatpush.bf16.msra.mxu2 %v2830_v2  ;;  %1539 = vmatmul.bf16.vlgmr.msrb.gmra.mxu1 %v3984_v51  ;;  %v3618_v51 = vld [vmem:[%s5456_s3 + $0xd4] sm:$0xf0] }
  0xc5   :  { %2007 = vmatpush.bf16.msra.mxu1 %v3198_v20  ;;  %1576 = vmatpush.bf16.msrb.mxu0 %v2958_v28  ;;  %v3182_v44 = vor.u32 %v3618_v51, %v3181_v39  ;;  %v3608_v20 = vld [vmem:[%s5456_s3 + $0x84] sm:$0xf0]  ;;  %v3603_v28 = vld [vmem:[%s5456_s3 + $0x64] sm:$0xf]  ;;  %v3601_v51 = vld [vmem:[%s5456_s3 + $0x54] sm:$0xf] }
  0xc6   :  { %1552 = vmatmul.bf16.vlgmr.msrb.gmra.mxu3 %v3997_v57  ;;  %v3109_v57 = vld [vmem:[%s5456_s3 + $0x40] sm:$0xf]  ;;  %v3142_v27 = vor.u32 %v3608_v20, %v3141_v19  ;;  %v3632_v19 = vld [vmem:[%s5456_s3 + $0x144] sm:$0xf0] }
  0xc7   :  { %1994 = vmatpush.bf16.msra.mxu3 %v3134_v17  ;;  %v3110_v47 = vor.u32 %v3600_v43, %v3109_v57  ;;  %v3605_v17 = vld [vmem:[%s5456_s3 + $0x74] sm:$0xf]  ;;  %v3183_v43 = vld [vmem:[%s5456_s3 + $0xd8] sm:$0xf0] }
  0xc8   :  { %1564 = vmatpush.bf16.msra.mxu2 %v2814_v21  ;;  %v1295_v5 = vpop.f32.mrf.mxu0  ;;  %v3621_v21 = vld [vmem:[%s5456_s3 + $0xf4] sm:$0xf] }
  0xc9   :  { %2008 = vmatpush.bf16.msra.mxu1 %v3190_v36  ;;  %1577 = vmatpush.bf16.msrb.mxu0 %v2942_v41  ;;  %v1332_v6 = vpop.f32.mrf.mxu3  ;;  %v3202_v31 = vor.u32 %v3621_v21, %v3199_v22  ;;  %v241_v36 = vperm.slane %v4944_v49, 1  ;;  %v3194_v41 = vor.u32 %v3619_v14, %v3191_v34  ;;  %v3617_v57 = vld [vmem:[%s5456_s3 + $0xd4] sm:$0xf]  ;;  %v3595_v5 = vld [vmem:[%s5456_s3 + $0x24] sm:$0xf] }
  0xca   :  { %v3151_v21 = vld [vmem:[%s5456_s3 + $0x98] sm:$0xf0]  ;;  %v3221_v14 = vld [vmem:[%s5456_s3 + $0x120] sm:$0xf]  ;;  %v3628_v34 = vld [vmem:[%s5456_s3 + $0x124] sm:$0xf0] }
  0xcb   :  { %1995 = vmatpush.bf16.msra.mxu3 %v3126_v29  ;;  %1565 = vmatmul.bf16.vlgmr.msra.gmra.mxu2 %v4198_v30  ;;  %v1268_v30 = vadd.f32 %v4913_v32, %v1255_v40  ;;  %v3165_v32 = vld [vmem:[%s5456_s3 + $0xb0] sm:$0xf]  ;;  %v1308_v8 = vpop.f32.mrf.mxu1  ;;  %v3127_v29 = vld [vmem:[%s5456_s3 + $0x68] sm:$0xf0]  ;;  %v3119_v40 = vld [vmem:[%s5456_s3 + $0x58] sm:$0xf0]  ;;  %v1333_v26 = vadd.f32 %v1332_v6, %v241_v36 }
  0xcc   :  { %1590 = vmatpush.bf16.msrb.mxu2 %v3070_v24  ;;  %1578 = vmatmul.bf16.vlgmr.msrb.gmra.mxu0 %v4209_v35  ;;  %v3596_v35 = vld [vmem:[%s5456_s3 + $0x24] sm:$0xf0]  ;;  %v3166_v63 = vor.u32 %v3614_v58, %v3165_v32  ;;  %v3130_v39 = vor.u32 %v3603_v28, %v3127_v29  ;;  %v3175_v32 = vld [vmem:[%s5456_s3 + $0xc8] sm:$0xf0]  ;;  %v3245_v58 = vld [vmem:[%s5456_s3 + $0x150] sm:$0xf] }
  0xcd   :  { %2009 = vmatpush.bf16.msra.mxu1 %v3182_v44  ;;  %v1281_v59 = vadd.f32 %v4921_v37, %v1268_v30  ;;  %v3612_v37 = vld [vmem:[%s5456_s3 + $0xa4] sm:$0xf0]  ;;  %v3094_v1 = vor.u32 %v3596_v35, %v3093_v62  ;;  %v3638_v44 = vld [vmem:[%s5456_s3 + $0x174] sm:$0xf0]  ;;  %v3253_v30 = vld [vmem:[%s5456_s3 + $0x160] sm:$0xf] }
  0xce   :  { %v3158_v7 = vor.u32 %v3612_v37, %v3157_v0  ;;  %v1345_v11 = vpop.f32.mrf.mxu2  ;;  %v3597_v62 = vld [vmem:[%s5456_s3 + $0x34] sm:$0xf]  ;;  %v3103_v35 = vld [vmem:[%s5456_s3 + $0x38] sm:$0xf0]  ;;  %v3095_v6 = vld [vmem:[%s5456_s3 + $0x28] sm:$0xf0] }
  0xcf   :  { %1996 = vmatpush.bf16.msra.mxu3 %v3118_v42  ;;  %v1294_v61 = vadd.f32 %v1293_v48, %v1281_v59  ;;  %v3261_v42 = vld [vmem:[%s5456_s3 + $0x170] sm:$0xf]  ;;  %v3122_v48 = vor.u32 %v3601_v51, %v3119_v40  ;;  %v3634_v59 = vld [vmem:[%s5456_s3 + $0x154] sm:$0xf0]  ;;  %v3106_v3 = vor.u32 %v3597_v62, %v3103_v35  ;;  %v3591_v28 = vld [vmem:[%s5456_s3 + $0x4] sm:$0xf] }
  0xd0   :  { %v3262_v46 = vor.u32 %v3638_v44, %v3261_v42  ;;  %v3246_v0 = vor.u32 %v3634_v59, %v3245_v58  ;;  %v3143_v51 = vld [vmem:[%s5456_s3 + $0x88] sm:$0xf0]  ;;  %v3222_v42 = vor.u32 %v3628_v34, %v3221_v14  ;;  %v3213_v44 = vld [vmem:[%s5456_s3 + $0x110] sm:$0xf]  ;;  %v3637_v58 = vld [vmem:[%s5456_s3 + $0x174] sm:$0xf] }
  0xd1   :  { %2010 = vmatpush.bf16.msra.mxu1 %v3174_v53  ;;  %v1307_v2 = vadd.f32 %v1306_v54, %v1294_v61  ;;  %v1334_v25 = vpop.f32.mrf.mxu3  ;;  %v3186_v53 = vor.u32 %v3617_v57, %v3183_v43  ;;  %v3615_v54 = vld [vmem:[%s5456_s3 + $0xc4] sm:$0xf]  ;;  %v3114_v61 = vor.u32 %v3599_v50, %v3111_v52  ;;  %v3205_v52 = vld [vmem:[%s5456_s3 + $0x100] sm:$0xf]  ;;  %v3263_v59 = vld [vmem:[%s5456_s3 + $0x178] sm:$0xf0] }
  0xd2   :  { %2020 = vmatpush.bf16.msra.mxu2 %v3262_v46 }
  0xd3   :  { %1997 = vmatpush.bf16.msra.mxu3 %v3110_v47  ;;  %v1320_v13 = vadd.f32 %v1319_v38, %v1307_v2  ;;  %v3636_v47 = vld [vmem:[%s5456_s3 + $0x164] sm:$0xf0]  ;;  %v3167_v2 = vld [vmem:[%s5456_s3 + $0xb8] sm:$0xf0] }
  0xd4   :  { %v3254_v56 = vor.u32 %v3636_v47, %v3253_v30 }
  0xd5   :  { %2011 = vmatpush.bf16.msra.mxu1 %v3166_v63  ;;  %v1596_v24 = vmax.f32 %v1320_v13, 0.0  ;;  %v3178_v63 = vor.u32 %v3615_v54, %v3175_v32  ;;  %v3593_v13 = vld [vmem:[%s5456_s3 + $0x14] sm:$0xf] }
  0xd6   :  { %v1347_v33 = vpop.f32.mrf.mxu2  ;;  %2021 = vmatpush.bf16.msra.mxu2 %v3254_v56 }
  0xd7   :  { %1998 = vmatpush.bf16.msra.mxu3 %v3102_v60  ;;  %v5126_v38 = vpack.c.bf16 %v1596_v24, %v1596_v24  ;;  %v1346_v60 = vadd.f32 %v1345_v11, %v1333_v26  ;;  %v3630_v24 = vld [vmem:[%s5456_s3 + $0x134] sm:$0xf0] }
  0xd8   :  { %v3626_v26 = vld [vmem:[%s5456_s3 + $0x114] sm:$0xf0] }
  0xd9   :  { %2012 = vmatpush.bf16.msra.mxu1 %v3158_v7 }
  0xda   :  { %2022 = vmatpush.bf16.msra.mxu2 %v3246_v0  ;;  %v3247_v0 = vld [vmem:[%s5456_s3 + $0x158] sm:$0xf0] }
  0xdb   :  { %1999 = vmatpush.bf16.msra.mxu3 %v3094_v1  ;;  %3074 = vmatmul.msk.bf16.vlgmr.msrb.gmra.mxu2 %vm1228_vm0, %v4107_v45  ;;  %v3135_v45 = vld [vmem:[%s5456_s3 + $0x78] sm:$0xf0]  ;;  %v3613_v1 = vld [vmem:[%s5456_s3 + $0xb4] sm:$0xf] }
  0xdc   :  { %v3138_v4 = vor.u32 %v3605_v17, %v3135_v45  ;;  %v3170_v7 = vor.u32 %v3613_v1, %v3167_v2  ;;  %v3162_v17 = vor.u32 %v3611_v9, %v3159_v10  ;;  %v3237_v45 = vld [vmem:[%s5456_s3 + $0x140] sm:$0xf]  ;;  %v3631_v2 = vld [vmem:[%s5456_s3 + $0x144] sm:$0xf]  ;;  %v3231_v9 = vld [vmem:[%s5456_s3 + $0x138] sm:$0xf0] }
  0xdd   :  { %2013 = vmatpush.bf16.msra.mxu1 %v3150_v18  ;;  %v3609_v18 = vld [vmem:[%s5456_s3 + $0x94] sm:$0xf]  ;;  %v3238_v22 = vor.u32 %v3632_v19, %v3237_v45  ;;  %v3652_v19 = vld [vmem:[%s5456_s3 + $0x1e4] sm:$0xf0] }
  0xde   :  { %v3154_v33 = vor.u32 %v3609_v18, %v3151_v21  ;;  %v3317_v18 = vld [vmem:[%s5456_s3 + $0x1e0] sm:$0xf]  ;;  %v3625_v21 = vld [vmem:[%s5456_s3 + $0x114] sm:$0xf] }
  0xdf   :  { %2000 = vmatpush.bf16.msra.mxu3 %v3086_v12  ;;  %v3098_v12 = vor.u32 %v3595_v5, %v3095_v6  ;;  %2023 = vmatpush.bf16.msra.mxu2 %v3238_v22  ;;  %v3215_v22 = vld [vmem:[%s5456_s3 + $0x118] sm:$0xf0] }
  0xe1   :  { %2014 = vmatpush.bf16.msra.mxu1 %v3142_v27  ;;  %v1358_v37 = vpop.f32.mrf.mxu0  ;;  %v3090_v27 = vor.u32 %v3593_v13, %v3087_v15  ;;  %v3654_v13 = vld [vmem:[%s5456_s3 + $0x1f4] sm:$0xf0] }
  0xe2   :  { %v1359_v55 = vadd.f32 %v1358_v37, %v1346_v60  ;;  %v3266_v60 = vor.u32 %v3637_v58, %v3263_v59 }
  0xe3   :  { %2001 = vmatpush.bf16.msra.mxu3 %v3078_v23  ;;  %v1371_v8 = vpop.f32.mrf.mxu1  ;;  %v3229_v23 = vld [vmem:[%s5456_s3 + $0x130] sm:$0xf] }
  0xe4   :  { %v1372_v11 = vadd.f32 %v1371_v8, %v1359_v55  ;;  %v3230_v29 = vor.u32 %v3630_v24, %v3229_v23  ;;  %v3239_v55 = vld [vmem:[%s5456_s3 + $0x148] sm:$0xf0]  ;;  %v3629_v8 = vld [vmem:[%s5456_s3 + $0x134] sm:$0xf]  ;;  %v3309_v23 = vld [vmem:[%s5456_s3 + $0x1d0] sm:$0xf] }
  0xe5   :  { %2059 = vmatpush.bf16.msrb.mxu1 %v3202_v31  ;;  %v3079_v31 = vld [vmem:[%s5456_s3 + $0x8] sm:$0xf0]  ;;  %v3242_v5 = vor.u32 %v3631_v2, %v3239_v55  ;;  %v3650_v24 = vld [vmem:[%s5456_s3 + $0x1d4] sm:$0xf0] }
  0xe6   :  { %2002 = vmatmul.bf16.vlgmr.msra.gmra.mxu3 %v5126_v38  ;;  %2024 = vmatpush.bf16.msra.mxu2 %v3230_v29  ;;  %v3310_v29 = vor.u32 %v3650_v24, %v3309_v23  ;;  %v3641_v24 = vld [vmem:[%s5456_s3 + $0x194] sm:$0xf] }
  0xe7   :  { %2046 = vmatpush.bf16.msrb.mxu3 %v3138_v4 }
  0xe9   :  { %2060 = vmatpush.bf16.msrb.mxu1 %v3194_v41  ;;  %v1384_v16 = vpop.f32.mrf.mxu3  ;;  %v1360_v20 = vpop.f32.mrf.mxu0  ;;  %v3082_v41 = vor.u32 %v3591_v28, %v3079_v31  ;;  %v3218_v28 = vor.u32 %v3625_v21, %v3215_v22  ;;  %v3623_v31 = vld [vmem:[%s5456_s3 + $0x104] sm:$0xf]  ;;  %v3287_v21 = vld [vmem:[%s5456_s3 + $0x1a8] sm:$0xf0]  ;;  %v243_v22 = vperm.slane %v4944_v49, 3 }
  0xea   :  { %v1385_v4 = vadd.f32 %v1384_v16, %v1372_v11  ;;  %2025 = vmatpush.bf16.msra.mxu2 %v3222_v42  ;;  %v3234_v11 = vor.u32 %v3629_v8, %v3231_v9  ;;  %v3627_v16 = vld [vmem:[%s5456_s3 + $0x124] sm:$0xf]  ;;  %v3318_v20 = vor.u32 %v3652_v19, %v3317_v18  ;;  %v3295_v18 = vld [vmem:[%s5456_s3 + $0x1b8] sm:$0xf0] }
  0xeb   :  { %2047 = vmatpush.bf16.msrb.mxu3 %v3130_v39  ;;  %v1373_v36 = vpop.f32.mrf.mxu1  ;;  %v3607_v39 = vld [vmem:[%s5456_s3 + $0x84] sm:$0xf] }
  0xec   :  { %v3146_v57 = vor.u32 %v3607_v39, %v3143_v51  ;;  %v3301_v39 = vld [vmem:[%s5456_s3 + $0x1c0] sm:$0xf]  ;;  %v3648_v51 = vld [vmem:[%s5456_s3 + $0x1c4] sm:$0xf0] }
  0xed   :  { %2061 = vmatpush.bf16.msrb.mxu1 %v3186_v53  ;;  %v3624_v53 = vld [vmem:[%s5456_s3 + $0x104] sm:$0xf0] }
  0xee   :  { %v1397_v25 = vpop.f32.mrf.mxu2  ;;  %v3206_v56 = vor.u32 %v3624_v53, %v3205_v52 }
  0xef   :  { %2048 = vmatpush.bf16.msrb.mxu3 %v3122_v48  ;;  %v1398_v40 = vadd.f32 %v1397_v25, %v1385_v4  ;;  %v3214_v48 = vor.u32 %v3626_v26, %v3213_v44  ;;  %v242_v4 = vperm.slane %v4944_v49, 2  ;;  %v3639_v49 = vld [vmem:[%s5456_s3 + $0x184] sm:$0xf] }
  0xf1   :  { %2062 = vmatpush.bf16.msrb.mxu1 %v3178_v63  ;;  %v1386_v43 = vpop.f32.mrf.mxu3  ;;  %v1410_v46 = vpop.f32.mrf.mxu0  ;;  %2026 = vmatpush.bf16.msra.mxu2 %v3214_v48  ;;  %v3633_v63 = vld [vmem:[%s5456_s3 + $0x154] sm:$0xf] }
  0xf2   :  { %v1411_v30 = vadd.f32 %v1410_v46, %v1398_v40  ;;  %v3250_v1 = vor.u32 %v3633_v63, %v3247_v0  ;;  %v3646_v43 = vld [vmem:[%s5456_s3 + $0x1b4] sm:$0xf0] }
  0xf3   :  { %2049 = vmatpush.bf16.msrb.mxu3 %v3114_v61  ;;  %v3635_v61 = vld [vmem:[%s5456_s3 + $0x164] sm:$0xf] }
  0xf4   :  { %v1597_v50 = vmax.f32 %v1411_v30, 0.0  ;;  %v3285_v30 = vld [vmem:[%s5456_s3 + $0x1a0] sm:$0xf] }
  0xf5   :  { %2063 = vmatpush.bf16.msrb.mxu1 %v3170_v7  ;;  %2027 = vmatpush.bf16.msra.mxu2 %v3206_v56  ;;  %v3642_v56 = vld [vmem:[%s5456_s3 + $0x194] sm:$0xf0] }
  0xf6   :  { %v1399_v47 = vpop.f32.mrf.mxu2  ;;  %v1601_v54 = vpack.c.bf16 %v1597_v50, %v1597_v50 }
  0xf7   :  { %2050 = vmatpush.bf16.msrb.mxu3 %v3106_v3  ;;  %v3644_v47 = vld [vmem:[%s5456_s3 + $0x1a4] sm:$0xf0] }
  0xf8   :  { %2015 = vmatmul.bf16.vlgmr.msra.gmra.mxu1 %v1601_v54  ;;  %v3286_v50 = vor.u32 %v3644_v47, %v3285_v30 }
  0xf9   :  { %2064 = vmatpush.bf16.msrb.mxu1 %v3162_v17  ;;  %v1412_v32 = vpop.f32.mrf.mxu0  ;;  %2072 = vmatpush.bf16.msrb.mxu2 %v3266_v60  ;;  %v3223_v17 = vld [vmem:[%s5456_s3 + $0x128] sm:$0xf0] }
  0xfa   :  { %v3226_v45 = vor.u32 %v3627_v16, %v3223_v17  ;;  %v3645_v17 = vld [vmem:[%s5456_s3 + $0x1b4] sm:$0xf] }
  0xfb   :  { %2051 = vmatpush.bf16.msrb.mxu3 %v3098_v12  ;;  %v3325_v12 = vld [vmem:[%s5456_s3 + $0x1f0] sm:$0xf]  ;;  %v3298_v19 = vor.u32 %v3645_v17, %v3295_v18  ;;  %v3664_v17 = vld [vmem:[%s5458_s5 + $0x48] sm:$0xff] }
  0xfc   :  { %v3326_v15 = vor.u32 %v3654_v13, %v3325_v12  ;;  %v3647_v13 = vld [vmem:[%s5456_s3 + $0x1c4] sm:$0xf] }
  0xfd   :  { %2065 = vmatpush.bf16.msrb.mxu1 %v3154_v33  ;;  %v3207_v33 = vld [vmem:[%s5456_s3 + $0x108] sm:$0xf0] }
  0xfe   :  { %2033 = vmatpush.bf16.msra.mxu0 %v3326_v15  ;;  %v3210_v36 = vor.u32 %v3623_v31, %v3207_v33  ;;  %v3303_v15 = vld [vmem:[%s5456_s3 + $0x1c8] sm:$0xf0] }
  0xff   :  { %2052 = vmatpush.bf16.msrb.mxu3 %v3090_v27  ;;  %v3306_v16 = vor.u32 %v3647_v13, %v3303_v15  ;;  %v3666_v13 = vld [vmem:[%s5458_s5 + $0x58] sm:$0xff] }
 0x101   :  { %2066 = vmatpush.bf16.msrb.mxu1 %v3146_v57  ;;  %v1423_v35 = vpop.f32.mrf.mxu1  ;;  %v3293_v57 = vld [vmem:[%s5456_s3 + $0x1b0] sm:$0xf] }
 0x102   :  { %2034 = vmatpush.bf16.msra.mxu0 %v3318_v20  ;;  %v1424_v34 = vadd.f32 %v1423_v35, %v242_v4  ;;  %v3294_v46 = vor.u32 %v3646_v43, %v3293_v57  ;;  %v3643_v20 = vld [vmem:[%s5456_s3 + $0x1a4] sm:$0xf]  ;;  %v3279_v4 = vld [vmem:[%s5456_s3 + $0x198] sm:$0xf0] }
 0x103   :  { %2053 = vmatpush.bf16.msrb.mxu3 %v3082_v41  ;;  %v3302_v41 = vor.u32 %v3648_v51, %v3301_v39  ;;  %v3290_v23 = vor.u32 %v3643_v20, %v3287_v21 }
 0x105   :  { %v1449_v37 = vpop.f32.mrf.mxu0 }
 0x106   :  { %2054 = vmatmul.bf16.vlgmr.msrb.gmra.mxu3 %v5126_v38  ;;  %v3255_v38 = vld [vmem:[%s5456_s3 + $0x168] sm:$0xf0]  ;;  %2035 = vmatpush.bf16.msra.mxu0 %v3310_v29 }
 0x107   :  { %v3258_v62 = vor.u32 %v3635_v61, %v3255_v38  ;;  %v3269_v38 = vld [vmem:[%s5456_s3 + $0x180] sm:$0xf] }
 0x108   :  { %2067 = vmatmul.bf16.vlgmr.msrb.gmra.mxu1 %v1601_v54  ;;  %v3277_v54 = vld [vmem:[%s5456_s3 + $0x190] sm:$0xf] }
 0x109   :  { %2073 = vmatpush.bf16.msrb.mxu2 %v3258_v62  ;;  %v1425_v3 = vpop.f32.mrf.mxu1  ;;  %v1436_v7 = vpop.f32.mrf.mxu3  ;;  %v3278_v59 = vor.u32 %v3642_v56, %v3277_v54  ;;  %v3640_v62 = vld [vmem:[%s5456_s3 + $0x184] sm:$0xf0] }
 0x10a   :  { %v1437_v40 = vadd.f32 %v1436_v7, %v1424_v34  ;;  %2036 = vmatpush.bf16.msra.mxu0 %v3302_v41  ;;  %v3270_v63 = vor.u32 %v3640_v62, %v3269_v38  ;;  %v3651_v3 = vld [vmem:[%s5456_s3 + $0x1e4] sm:$0xf] }
 0x10c   :  { %v1450_v44 = vadd.f32 %v1449_v37, %v1437_v40  ;;  %v3653_v37 = vld [vmem:[%s5456_s3 + $0x1f4] sm:$0xf] }
 0x10d   :  { %2074 = vmatpush.bf16.msrb.mxu2 %v3250_v1  ;;  %v1451_v10 = vpop.f32.mrf.mxu0  ;;  %v3327_v1 = vld [vmem:[%s5456_s3 + $0x1f8] sm:$0xf0] }
 0x10e   :  { %v1462_v6 = vpop.f32.mrf.mxu2  ;;  %2037 = vmatpush.bf16.msra.mxu0 %v3294_v46  ;;  %v3330_v2 = vor.u32 %v3653_v37, %v3327_v1  ;;  %v3649_v10 = vld [vmem:[%s5456_s3 + $0x1d4] sm:$0xf]  ;;  %v3660_v1 = vld [vmem:[%s5458_s5 + $0x28] sm:$0xff] }
 0x10f   :  { %v1463_v48 = vadd.f32 %v1462_v6, %v1450_v44  ;;  %v3661_v37 = vld [vmem:[%s5458_s5 + $0x30] sm:$0xff] }
 0x111   :  { %2075 = vmatpush.bf16.msrb.mxu2 %v3242_v5  ;;  %v1438_v27 = vpop.f32.mrf.mxu3  ;;  %v3319_v5 = vld [vmem:[%s5456_s3 + $0x1e8] sm:$0xf0] }
 0x112   :  { %2038 = vmatpush.bf16.msra.mxu0 %v3286_v50  ;;  %v3322_v7 = vor.u32 %v3651_v3, %v3319_v5  ;;  %v3669_v3 = vld [vmem:[%s5458_s5 + $0x70] sm:$0xff]  ;;  %v3658_v5 = vld [vmem:[%s5458_s5 + $0x18] sm:$0xff] }
 0x115   :  { %2076 = vmatpush.bf16.msrb.mxu2 %v3234_v11  ;;  %v1501_v14 = vpop.f32.mrf.mxu0  ;;  %v3311_v11 = vld [vmem:[%s5456_s3 + $0x1d8] sm:$0xf0] }
 0x116   :  { %v1464_v25 = vpop.f32.mrf.mxu2  ;;  %2039 = vmatpush.bf16.msra.mxu0 %v3278_v59  ;;  %v3314_v12 = vor.u32 %v3649_v10, %v3311_v11  ;;  %v3655_v11 = vld [vmem:[%s5458_s5] sm:$0xff] }
 0x117   :  { %v3282_v25 = vor.u32 %v3641_v24, %v3279_v4 }
 0x119   :  { %2077 = vmatpush.bf16.msrb.mxu2 %v3226_v45 }
 0x11a   :  { %2040 = vmatpush.bf16.msra.mxu0 %v3270_v63 }
 0x11d   :  { %2078 = vmatpush.bf16.msrb.mxu2 %v3218_v28  ;;  %v1503_v42 = vpop.f32.mrf.mxu0 }
 0x11e   :  { %2085 = vmatpush.bf16.msrb.mxu0 %v3330_v2  ;;  %v3659_v2 = vld [vmem:[%s5458_s5 + $0x20] sm:$0xff] }
 0x121   :  { %2079 = vmatpush.bf16.msrb.mxu2 %v3210_v36  ;;  %v1475_v26 = vpop.f32.mrf.mxu1 }
 0x122   :  { %v1476_v52 = vadd.f32 %v1475_v26, %v1463_v48  ;;  %2086 = vmatpush.bf16.msrb.mxu0 %v3322_v7  ;;  %v3657_v7 = vld [vmem:[%s5458_s5 + $0x10] sm:$0xff] }
 0x126   :  { %2087 = vmatpush.bf16.msrb.mxu0 %v3314_v12  ;;  %v3667_v12 = vld [vmem:[%s5458_s5 + $0x60] sm:$0xff] }
 0x129   :  { %v1488_v53 = vpop.f32.mrf.mxu3  ;;  %v1477_v58 = vpop.f32.mrf.mxu1 }
 0x12a   :  { %v1489_v32 = vadd.f32 %v1488_v53, %v1476_v52  ;;  %v1527_v61 = vpop.f32.mrf.mxu0  ;;  %2088 = vmatpush.bf16.msrb.mxu0 %v3306_v16  ;;  %v1668_v52 = vld [vmem:[%s5457_s4] sm:$0x3]  ;;  %v3665_v16 = vld [vmem:[%s5458_s5 + $0x50] sm:$0xff] }
 0x12b   :  { %v1670_v53 = vperm.slane %v1668_v52, 0 }
 0x12c   :  { %v1502_v35 = vadd.f32 %v1501_v14, %v1489_v32  ;;  %v3271_v14 = vld [vmem:[%s5456_s3 + $0x188] sm:$0xf0] }
 0x12d   :  { %v3274_v36 = vor.u32 %v3639_v49, %v3271_v14  ;;  %v3672_v49 = vld [vmem:[%s5459_s6] ss:$0 sm:$0xff]  ;;  %s2278_s6 = sshll.u32 %s5460_s7, 4  ;;  %s2279_s6 = int_to_ptr.hbm [resolvable:$true] %s2278_s6 }
 0x12e   :  { %v1514_v60 = vpop.f32.mrf.mxu2  ;;  %v1598_v0 = vmax.f32 %v1502_v35, 0.0  ;;  %2089 = vmatpush.bf16.msrb.mxu0 %v3298_v19 }
 0x12f   :  { %v1515_v28 = vadd.f32 %v1514_v60, %v243_v22  ;;  %v1671_v60 = vperm.slane %v1668_v52, 1 }
 0x130   :  { %v1602_v55 = vpack.c.bf16 %v1598_v0, %v1598_v0  ;;  %v3662_v0 = vld [vmem:[%s5458_s5 + $0x38] sm:$0xff] }
 0x131   :  { %v1490_v6 = vpop.f32.mrf.mxu3  ;;  %v1528_v34 = vadd.f32 %v1527_v61, %v1515_v28  ;;  %2234 = vmatpush.bf16.msra.mxu3 %v3662_v0 }
 0x132   :  { %2028 = vmatmul.bf16.vlgmr.msra.gmra.mxu2 %v1602_v55  ;;  %v1529_v9 = vpop.f32.mrf.mxu0  ;;  %2090 = vmatpush.bf16.msrb.mxu0 %v3290_v23 }
 0x133   :  { %v3668_v9 = vld [vmem:[%s5458_s5 + $0x68] sm:$0xff] }
 0x135   :  { %2235 = vmatpush.bf16.msra.mxu3 %v3661_v37 }
 0x136   :  { %v1516_v8 = vpop.f32.mrf.mxu2  ;;  %2091 = vmatpush.bf16.msrb.mxu0 %v3282_v25 }
 0x137   :  { %v3656_v8 = vld [vmem:[%s5458_s5 + $0x8] sm:$0xff] }
 0x139   :  { %2236 = vmatpush.bf16.msra.mxu3 %v3660_v1 }
 0x13a   :  { %2092 = vmatpush.bf16.msrb.mxu0 %v3274_v36 }
 0x13d   :  { %2237 = vmatpush.bf16.msra.mxu3 %v3659_v2 }
 0x141   :  { %v1540_v45 = vpop.f32.mrf.mxu1  ;;  %2238 = vmatpush.bf16.msra.mxu3 %v3658_v5 }
 0x142   :  { %2080 = vmatmul.bf16.vlgmr.msrb.gmra.mxu2 %v1602_v55  ;;  %v1541_v39 = vadd.f32 %v1540_v45, %v1528_v34  ;;  %v3670_v55 = vld [vmem:[%s5458_s5 + $0x78] sm:$0xff]  ;;  %v3663_v45 = vld [vmem:[%s5458_s5 + $0x40] sm:$0xff]  ;;  %s3703_s5 = smov [#allocation2]  }
 0x143   :  { %2247 = vmatpush.bf16.msra.mxu1 %v3670_v55  ;;  %s2276_s20 = sshll.u32 %s3703_s5, 4  ;;  %s2277_s20 = int_to_ptr.vmem [resolvable:$true] %s2276_s20 }
 0x145   :  { %2239 = vmatpush.bf16.msra.mxu3 %v3657_v7 }
 0x147   :  { %2248 = vmatpush.bf16.msra.mxu1 %v3669_v3 }
 0x149   :  { %v1553_v27 = vpop.f32.mrf.mxu3  ;;  %v1542_v29 = vpop.f32.mrf.mxu1  ;;  %2240 = vmatpush.bf16.msra.mxu3 %v3656_v8 }
 0x14a   :  { %v1579_v33 = vpop.f32.mrf.mxu0  ;;  %v1554_v40 = vadd.f32 %v1553_v27, %v1541_v39 }
 0x14b   :  { %2249 = vmatpush.bf16.msra.mxu1 %v3668_v9 }
 0x14d   :  { %2241 = vmatpush.bf16.msra.mxu3 %v3655_v11 }
 0x14e   :  { %v1566_v31 = vpop.f32.mrf.mxu2 }
 0x14f   :  { %v1567_v57 = vadd.f32 %v1566_v31, %v1554_v40  ;;  %2250 = vmatpush.bf16.msra.mxu1 %v3667_v12 }
 0x151   :  { %v1555_v51 = vpop.f32.mrf.mxu3  ;;  %v1580_v43 = vadd.f32 %v1579_v33, %v1567_v57 }
 0x152   :  { %v1581_v42 = vpop.f32.mrf.mxu0 }
 0x153   :  { %2251 = vmatpush.bf16.msra.mxu1 %v3666_v13 }
 0x156   :  { %v1568_v41 = vpop.f32.mrf.mxu2 }
 0x157   :  { %2252 = vmatpush.bf16.msra.mxu1 %v3665_v16 }
 0x15b   :  { %2253 = vmatpush.bf16.msra.mxu1 %v3664_v17 }
 0x15e   :  { %v1592_v44 = vpop.f32.mrf.mxu2 }
 0x15f   :  { %v1593_v26 = vadd.f32 %v1592_v44, %v1580_v43  ;;  %2254 = vmatpush.bf16.msra.mxu1 %v3663_v45 }
 0x161   :  { %v1599_v46 = vmax.f32 %v1593_v26, 0.0 }
 0x163   :  { %v1603_v30 = vpack.c.bf16 %v1599_v46, %v1599_v46 }
 0x165   :  { %2041 = vmatmul.bf16.vlgmr.msra.gmra.mxu0 %v1603_v30 }
 0x166   :  { %v1594_v47 = vpop.f32.mrf.mxu2 }
 0x169   :  { %v2003_v48 = vpop.f32.mrf.mxu3 }
 0x16a   :  { %v2004_v54 = vadd.f32 %v2003_v48, %v1670_v53 }
 0x171   :  { %v2005_v50 = vpop.f32.mrf.mxu3 }
 0x175   :  { %2093 = vmatmul.bf16.vlgmr.msrb.gmra.mxu0 %v1603_v30  ;;  %v2016_v56 = vpop.f32.mrf.mxu1 }
 0x176   :  { %v2017_v32 = vadd.f32 %v2016_v56, %v2004_v54 }
 0x17d   :  { %v2018_v59 = vpop.f32.mrf.mxu1 }
 0x185   :  { %v2068_v62 = vpop.f32.mrf.mxu1 }
 0x189   :  { %v2055_v58 = vpop.f32.mrf.mxu3 }
 0x18a   :  { %v2056_v38 = vadd.f32 %v2055_v58, %v1671_v60 }
 0x18c   :  { %v2069_v35 = vadd.f32 %v2068_v62, %v2056_v38 }
 0x18d   :  { %v2070_v63 = vpop.f32.mrf.mxu1 }
 0x191   :  { %v2057_v61 = vpop.f32.mrf.mxu3 }
 0x1b5   :  { %v2029_v6 = vpop.f32.mrf.mxu2 }
 0x1b6   :  { %v2030_v19 = vadd.f32 %v2029_v6, %v2017_v32 }
 0x1bd   :  { %v2031_v10 = vpop.f32.mrf.mxu2 }
 0x1c5   :  { %v2081_v15 = vpop.f32.mrf.mxu2 }
 0x1c6   :  { %v2082_v4 = vadd.f32 %v2081_v15, %v2069_v35 }
 0x1cd   :  { %v2083_v18 = vpop.f32.mrf.mxu2 }
 0x1e2   :  { %v2042_v20 = vpop.f32.mrf.mxu0 }
 0x1e3   :  { %v2043_v21 = vadd.f32 %v2042_v20, %v2030_v19 }
 0x1e5   :  { %v2098_v22 = vmax.f32 %v2043_v21, 0.0 }
 0x1e7   :  { %v2100_v23 = vpack.c.bf16 %v2098_v22, %v2098_v22 }
 0x1e9   :  { %2242 = vmatmul.bf16.vlgmr.msra.gmra.mxu3 %v2100_v23 }
 0x1ea   :  { %v2044_v24 = vpop.f32.mrf.mxu0 }
 0x1f2   :  { %v2094_v25 = vpop.f32.mrf.mxu0 }
 0x1f3   :  { %v2095_v27 = vadd.f32 %v2094_v25, %v2082_v4 }
 0x1f5   :  { %v2099_v28 = vmax.f32 %v2095_v27, 0.0 }
 0x1f7   :  { %v2101_v29 = vpack.c.bf16 %v2099_v28, %v2099_v28 }
 0x1f9   :  { %2255 = vmatmul.bf16.vlgmr.msra.gmra.mxu1 %v2101_v29 }
 0x1fa   :  { %v2096_v31 = vpop.f32.mrf.mxu0 }
 0x26c   :  { %v2243_v33 = vpop.f32.mrf.mxu3 }
 0x26d   :  { %v2244_v34 = vadd.f32 %v3672_v49, %v2243_v33 }
 0x274   :  { %v2245_v14 = vpop.f32.mrf.mxu3 }
 0x276   :  { %v2256_v36 = vpop.f32.mrf.mxu1 }
 0x277   :  { %v2257_v39 = vadd.f32 %v2256_v36, %v2244_v34 }
 0x279   :  { %2260 = vmax.xlane.f32.xlu0 %v2257_v39 }
 0x27e   :  { %v2258_v51 = vpop.f32.mrf.mxu1 }
 0x2ec   :  { %v2261_v40 = vpop.xlane.xlu0 %2260 }
 0x2ed   :  { %v2262_v41 = vsub.f32 %v2257_v39, %v2261_v40 }
 0x2ef   :  { %v2263_v42 = vmul.f32 1.442695, %v2262_v41 }
 0x2f1   :  { %3673 = vpow2.f32 %v2263_v42 }
 0x2f7   :  { %v3674_v57 = vpop.eup %3673 }
 0x2f8   :  { %2265 = vadd.xlane.f32.xlu0 %v3674_v57 }
 0x36b   :  { %v2266_v43 = vpop.xlane.xlu0 %2265 }
 0x36c   :  { %3675 = vlog2.f32 %v2266_v43 }
 0x372   :  { %v3676_v44 = vpop.eup %3675 }
 0x373   :  { %v2268_v26 = vmul.f32 0.6931472, %v3676_v44 }
 0x375   :  { %v2269_v46 = vsub.f32 %v2262_v41, %v2268_v26 }
 0x377   :  { %2270 = vst [vmem:[#allocation2] sm:$0xff] %v2269_v46 }
 0x378   :  { %2281 = dma.vmem_to_hbm [thread:$0]  %s2277_s20, 128, %s2279_s6, [#allocation3]  }
 0x379   :  { %3701 = dma.done.wait [#allocation3], 128  }
 0x37a   :  { %3702 = vsyncadd [#allocation3], 4294967168 }
 0x37b   :  { %2286 = vsyncpa [#allocation3], 1 }

</bundles_post_ra>
